<compile_context>
chip_gen: v5e
topology: v5e:2x2
jax: 0.10.0
libtpu: 0.0.40
codegen_flags: <defaults>
</compile_context>

<pallas_src>
import jax
import jax.numpy as jnp
from jax.experimental import pallas as pl
from jax.experimental.pallas import tpu as pltpu


def lstm_kernel(x_ref, wih_ref, whh_ref, b_ref, wlin_ref, blin_ref, out_ref):
    seq = x_ref.shape[0]
    HP = whh_ref.shape[0]          # lane-padded per-gate hidden width (mult. of 128)

    # --- Hoisted input projection (+ combined bias) for ALL timesteps -------
    # One MXU matmul instead of one per serialized step.
    gx = (
        jnp.dot(x_ref[...], wih_ref[...], preferred_element_type=jnp.float32)
        + b_ref[...]
    )                              # (seq, 4*HP)

    whh = whh_ref[...]             # (HP, 4*HP) recurrent weight

    h = jnp.zeros((1, HP), jnp.float32)
    c = jnp.zeros((1, HP), jnp.float32)

    # --- Fully unrolled recurrence (seq is static & small) ------------------
    for t in range(seq):
        gates = gx[t:t + 1, :] + jnp.dot(
            h, whh, preferred_element_type=jnp.float32
        )                                           # (1, 4*HP)
        # Each slice below is a whole, lane-aligned 128-lane block.
        i_g = jax.nn.sigmoid(gates[:, 0 * HP:1 * HP])
        f_g = jax.nn.sigmoid(gates[:, 1 * HP:2 * HP])
        g_g = jnp.tanh(gates[:, 2 * HP:3 * HP])
        o_g = jax.nn.sigmoid(gates[:, 3 * HP:4 * HP])
        c = f_g * c + i_g * g_g
        h = o_g * jnp.tanh(c)

    # --- Final linear (output_size == 1): VPU multiply + lane reduce --------
    out_ref[...] = (
        jnp.sum(h * wlin_ref[...], axis=-1, keepdims=True) + blin_ref[...]
    )                                               # (1, 1)


def lstm_forward(x, w_ih, w_hh, b_ih, b_hh, w_lin, b_lin):
    """x: (seq, input).  PyTorch-convention params:
       w_ih (4H, in), w_hh (4H, H), b_ih (4H,), b_hh (4H,),
       w_lin (out, H), b_lin (out,).  Returns predictions[-1], shape (out,)."""
    x = jnp.asarray(x, jnp.float32)
    H = w_hh.shape[1]
    out_size = w_lin.shape[0]
    assert out_size == 1, "module is defined with output_size=1"
    HP = max(128, ((H + 127) // 128) * 128)   # lane-aligned per-gate width

    # Split PyTorch (4H, D) weights into i/f/g/o gate blocks, transpose for
    # row-vector matmuls, and zero-pad each gate block to HP lanes.
    def pad_gates_T(w):                       # (4H, D) -> (D, 4*HP)
        wt = jnp.asarray(w, jnp.float32).T    # (D, 4H)
        blocks = [
            jnp.pad(wt[:, g * H:(g + 1) * H], ((0, 0), (0, HP - H)))
            for g in range(4)
        ]
        return jnp.concatenate(blocks, axis=1)

    wih_p = pad_gates_T(w_ih)                              # (in, 4*HP)
    whh_p = jnp.pad(pad_gates_T(w_hh), ((0, HP - H), (0, 0)))  # (HP, 4*HP)

    b_all = jnp.asarray(b_ih, jnp.float32) + jnp.asarray(b_hh, jnp.float32)
    b_p = jnp.concatenate(
        [jnp.pad(b_all[g * H:(g + 1) * H], (0, HP - H)) for g in range(4)]
    )[None, :]                                             # (1, 4*HP)

    wlin_row = jnp.pad(
        jnp.asarray(w_lin, jnp.float32).reshape(1, H), ((0, 0), (0, HP - H))
    )                                                      # (1, HP)
    blin = jnp.asarray(b_lin, jnp.float32).reshape(1, 1)   # (1, 1)

    vmem = pl.BlockSpec(memory_space=pltpu.MemorySpace.VMEM)
    out = pl.pallas_call(
        lstm_kernel,
        out_shape=jax.ShapeDtypeStruct((1, 1), jnp.float32),
        in_specs=[vmem] * 6,
        out_specs=vmem,
    )(x, wih_p, whh_p, b_p, wlin_row, blin)
    return out[0]                                          # (1,) == predictions[-1]


def lstm_reference(x, w_ih, w_hh, b_ih, b_hh, w_lin, b_lin):
    """Pure-JAX reference matching PyTorch nn.LSTM + nn.Linear semantics."""
    H = w_hh.shape[1]
    h = jnp.zeros((H,), jnp.float32)
    c = jnp.zeros((H,), jnp.float32)
    for t in range(x.shape[0]):
        gates = w_ih @ x[t] + b_ih + w_hh @ h + b_hh
        i = jax.nn.sigmoid(gates[0 * H:1 * H])
        f = jax.nn.sigmoid(gates[1 * H:2 * H])
        g = jnp.tanh(gates[2 * H:3 * H])
        o = jax.nn.sigmoid(gates[3 * H:4 * H])
        c = f * c + i * g
        h = o * jnp.tanh(c)
    return w_lin @ h + b_lin


if __name__ == "__main__":
    SEQ, INPUT, HIDDEN, OUT = 8, 5, 32, 1

    key = jax.random.PRNGKey(0)
    ks = jax.random.split(key, 8)
    k = 1.0 / jnp.sqrt(jnp.float32(HIDDEN))  # PyTorch default init bound

    x = jax.random.normal(ks[0], (SEQ, INPUT), jnp.float32)
    w_ih = jax.random.uniform(ks[1], (4 * HIDDEN, INPUT), jnp.float32, -k, k)
    w_hh = jax.random.uniform(ks[2], (4 * HIDDEN, HIDDEN), jnp.float32, -k, k)
    b_ih = jax.random.uniform(ks[3], (4 * HIDDEN,), jnp.float32, -k, k)
    b_hh = jax.random.uniform(ks[4], (4 * HIDDEN,), jnp.float32, -k, k)
    w_lin = jax.random.uniform(ks[5], (OUT, HIDDEN), jnp.float32, -k, k)
    b_lin = jax.random.uniform(ks[6], (OUT,), jnp.float32, -k, k)

    pred = lstm_forward(x, w_ih, w_hh, b_ih, b_hh, w_lin, b_lin)
    pred = jax.block_until_ready(pred)

    ref = lstm_reference(x, w_ih, w_hh, b_ih, b_hh, w_lin, b_lin)
    assert pred.shape == (OUT,), pred.shape
    assert jnp.allclose(pred, ref, atol=1e-5, rtol=1e-5), (pred, ref)

    print("KERNEL_OK")
</pallas_src>

<mosaic_0001>
module attributes {stable_mosaic.version = 11 : i64} {
  func.func @lstm_kernel(%arg0: memref<8x5xf32, #tpu.memory_space<vmem>>, %arg1: memref<5x512xf32, #tpu.memory_space<vmem>>, %arg2: memref<128x512xf32, #tpu.memory_space<vmem>>, %arg3: memref<1x512xf32, #tpu.memory_space<vmem>>, %arg4: memref<1x128xf32, #tpu.memory_space<vmem>>, %arg5: memref<1x1xf32, #tpu.memory_space<vmem>>, %arg6: memref<1x1xf32, #tpu.memory_space<vmem>>) attributes {dimension_semantics = [], scalar_prefetch = 0 : i64, scratch_operands = 0 : i64, tpu.core_type = #tpu.core_type<tc>} {
    %c0 = arith.constant 0 : index
    %c0_0 = arith.constant 0 : index
    %0 = vector.load %arg0[%c0, %c0_0] : memref<8x5xf32, #tpu.memory_space<vmem>>, vector<8x5xf32>
    %c0_1 = arith.constant 0 : index
    %c0_2 = arith.constant 0 : index
    %1 = vector.load %arg1[%c0_1, %c0_2] : memref<5x512xf32, #tpu.memory_space<vmem>>, vector<5x512xf32>
    %cst = arith.constant dense<0.000000e+00> : vector<8x512xf32>
    %2 = tpu.matmul %0, %1, %cst {dimension_numbers = #tpu.dot_dimension_numbers<[1], [0], [0], [1], [0, 0, 1, 1], [], []>} : vector<8x5xf32>, vector<5x512xf32>, vector<8x512xf32> -> vector<8x512xf32>
    %c0_3 = arith.constant 0 : index
    %c0_4 = arith.constant 0 : index
    %3 = vector.load %arg3[%c0_3, %c0_4] : memref<1x512xf32, #tpu.memory_space<vmem>>, vector<1x512xf32>
    %4 = vector.broadcast %3 : vector<1x512xf32> to vector<8x512xf32>
    %5 = arith.addf %2, %4 : vector<8x512xf32>
    %c0_5 = arith.constant 0 : index
    %c0_6 = arith.constant 0 : index
    %6 = vector.load %arg2[%c0_5, %c0_6] : memref<128x512xf32, #tpu.memory_space<vmem>>, vector<128x512xf32>
    %cst_7 = arith.constant 0.000000e+00 : f32
    %7 = vector.broadcast %cst_7 : f32 to vector<1x128xf32>
    %cst_8 = arith.constant 0.000000e+00 : f32
    %8 = vector.broadcast %cst_8 : f32 to vector<1x128xf32>
    %9 = vector.extract_strided_slice %5 {offsets = [0, 0], sizes = [1, 512], strides = [1, 1]} : vector<8x512xf32> to vector<1x512xf32>
    %cst_9 = arith.constant dense<0.000000e+00> : vector<1x512xf32>
    %10 = tpu.matmul %7, %6, %cst_9 {dimension_numbers = #tpu.dot_dimension_numbers<[1], [0], [0], [1], [0, 0, 1, 1], [], []>} : vector<1x128xf32>, vector<128x512xf32>, vector<1x512xf32> -> vector<1x512xf32>
    %11 = arith.addf %9, %10 : vector<1x512xf32>
    %12 = vector.extract_strided_slice %11 {offsets = [0, 0], sizes = [1, 128], strides = [1, 1]} : vector<1x512xf32> to vector<1x128xf32>
    %13 = arith.negf %12 : vector<1x128xf32>
    %14 = math.exp %13 : vector<1x128xf32>
    %cst_10 = arith.constant 1.000000e+00 : f32
    %15 = vector.broadcast %cst_10 : f32 to vector<1x128xf32>
    %16 = arith.addf %15, %14 : vector<1x128xf32>
    %17 = arith.divf %15, %16 : vector<1x128xf32>
    %18 = vector.extract_strided_slice %11 {offsets = [0, 128], sizes = [1, 128], strides = [1, 1]} : vector<1x512xf32> to vector<1x128xf32>
    %19 = arith.negf %18 : vector<1x128xf32>
    %20 = math.exp %19 : vector<1x128xf32>
    %cst_11 = arith.constant 1.000000e+00 : f32
    %21 = vector.broadcast %cst_11 : f32 to vector<1x128xf32>
    %22 = arith.addf %21, %20 : vector<1x128xf32>
    %23 = arith.divf %21, %22 : vector<1x128xf32>
    %24 = vector.extract_strided_slice %11 {offsets = [0, 256], sizes = [1, 128], strides = [1, 1]} : vector<1x512xf32> to vector<1x128xf32>
    %25 = math.tanh %24 : vector<1x128xf32>
    %26 = vector.extract_strided_slice %11 {offsets = [0, 384], sizes = [1, 128], strides = [1, 1]} : vector<1x512xf32> to vector<1x128xf32>
    %27 = arith.negf %26 : vector<1x128xf32>
    %28 = math.exp %27 : vector<1x128xf32>
    %cst_12 = arith.constant 1.000000e+00 : f32
    %29 = vector.broadcast %cst_12 : f32 to vector<1x128xf32>
    %30 = arith.addf %29, %28 : vector<1x128xf32>
    %31 = arith.divf %29, %30 : vector<1x128xf32>
    %32 = arith.mulf %23, %8 : vector<1x128xf32>
    %33 = arith.mulf %17, %25 : vector<1x128xf32>
    %34 = arith.addf %32, %33 : vector<1x128xf32>
    %35 = math.tanh %34 : vector<1x128xf32>
    %36 = arith.mulf %31, %35 : vector<1x128xf32>
    %37 = vector.extract_strided_slice %5 {offsets = [1, 0], sizes = [1, 512], strides = [1, 1]} : vector<8x512xf32> to vector<1x512xf32>
    %cst_13 = arith.constant dense<0.000000e+00> : vector<1x512xf32>
    %38 = tpu.matmul %36, %6, %cst_13 {dimension_numbers = #tpu.dot_dimension_numbers<[1], [0], [0], [1], [0, 0, 1, 1], [], []>} : vector<1x128xf32>, vector<128x512xf32>, vector<1x512xf32> -> vector<1x512xf32>
    %39 = arith.addf %37, %38 : vector<1x512xf32>
    %40 = vector.extract_strided_slice %39 {offsets = [0, 0], sizes = [1, 128], strides = [1, 1]} : vector<1x512xf32> to vector<1x128xf32>
    %41 = arith.negf %40 : vector<1x128xf32>
    %42 = math.exp %41 : vector<1x128xf32>
    %cst_14 = arith.constant 1.000000e+00 : f32
    %43 = vector.broadcast %cst_14 : f32 to vector<1x128xf32>
    %44 = arith.addf %43, %42 : vector<1x128xf32>
    %45 = arith.divf %43, %44 : vector<1x128xf32>
    %46 = vector.extract_strided_slice %39 {offsets = [0, 128], sizes = [1, 128], strides = [1, 1]} : vector<1x512xf32> to vector<1x128xf32>
    %47 = arith.negf %46 : vector<1x128xf32>
    %48 = math.exp %47 : vector<1x128xf32>
    %cst_15 = arith.constant 1.000000e+00 : f32
    %49 = vector.broadcast %cst_15 : f32 to vector<1x128xf32>
    %50 = arith.addf %49, %48 : vector<1x128xf32>
    %51 = arith.divf %49, %50 : vector<1x128xf32>
    %52 = vector.extract_strided_slice %39 {offsets = [0, 256], sizes = [1, 128], strides = [1, 1]} : vector<1x512xf32> to vector<1x128xf32>
    %53 = math.tanh %52 : vector<1x128xf32>
    %54 = vector.extract_strided_slice %39 {offsets = [0, 384], sizes = [1, 128], strides = [1, 1]} : vector<1x512xf32> to vector<1x128xf32>
    %55 = arith.negf %54 : vector<1x128xf32>
    %56 = math.exp %55 : vector<1x128xf32>
    %cst_16 = arith.constant 1.000000e+00 : f32
    %57 = vector.broadcast %cst_16 : f32 to vector<1x128xf32>
    %58 = arith.addf %57, %56 : vector<1x128xf32>
    %59 = arith.divf %57, %58 : vector<1x128xf32>
    %60 = arith.mulf %51, %34 : vector<1x128xf32>
    %61 = arith.mulf %45, %53 : vector<1x128xf32>
    %62 = arith.addf %60, %61 : vector<1x128xf32>
    %63 = math.tanh %62 : vector<1x128xf32>
    %64 = arith.mulf %59, %63 : vector<1x128xf32>
    %65 = vector.extract_strided_slice %5 {offsets = [2, 0], sizes = [1, 512], strides = [1, 1]} : vector<8x512xf32> to vector<1x512xf32>
    %cst_17 = arith.constant dense<0.000000e+00> : vector<1x512xf32>
    %66 = tpu.matmul %64, %6, %cst_17 {dimension_numbers = #tpu.dot_dimension_numbers<[1], [0], [0], [1], [0, 0, 1, 1], [], []>} : vector<1x128xf32>, vector<128x512xf32>, vector<1x512xf32> -> vector<1x512xf32>
    %67 = arith.addf %65, %66 : vector<1x512xf32>
    %68 = vector.extract_strided_slice %67 {offsets = [0, 0], sizes = [1, 128], strides = [1, 1]} : vector<1x512xf32> to vector<1x128xf32>
    %69 = arith.negf %68 : vector<1x128xf32>
    %70 = math.exp %69 : vector<1x128xf32>
    %cst_18 = arith.constant 1.000000e+00 : f32
    %71 = vector.broadcast %cst_18 : f32 to vector<1x128xf32>
    %72 = arith.addf %71, %70 : vector<1x128xf32>
    %73 = arith.divf %71, %72 : vector<1x128xf32>
    %74 = vector.extract_strided_slice %67 {offsets = [0, 128], sizes = [1, 128], strides = [1, 1]} : vector<1x512xf32> to vector<1x128xf32>
    %75 = arith.negf %74 : vector<1x128xf32>
    %76 = math.exp %75 : vector<1x128xf32>
    %cst_19 = arith.constant 1.000000e+00 : f32
    %77 = vector.broadcast %cst_19 : f32 to vector<1x128xf32>
    %78 = arith.addf %77, %76 : vector<1x128xf32>
    %79 = arith.divf %77, %78 : vector<1x128xf32>
    %80 = vector.extract_strided_slice %67 {offsets = [0, 256], sizes = [1, 128], strides = [1, 1]} : vector<1x512xf32> to vector<1x128xf32>
    %81 = math.tanh %80 : vector<1x128xf32>
    %82 = vector.extract_strided_slice %67 {offsets = [0, 384], sizes = [1, 128], strides = [1, 1]} : vector<1x512xf32> to vector<1x128xf32>
    %83 = arith.negf %82 : vector<1x128xf32>
    %84 = math.exp %83 : vector<1x128xf32>
    %cst_20 = arith.constant 1.000000e+00 : f32
    %85 = vector.broadcast %cst_20 : f32 to vector<1x128xf32>
    %86 = arith.addf %85, %84 : vector<1x128xf32>
    %87 = arith.divf %85, %86 : vector<1x128xf32>
    %88 = arith.mulf %79, %62 : vector<1x128xf32>
    %89 = arith.mulf %73, %81 : vector<1x128xf32>
    %90 = arith.addf %88, %89 : vector<1x128xf32>
    %91 = math.tanh %90 : vector<1x128xf32>
    %92 = arith.mulf %87, %91 : vector<1x128xf32>
    %93 = vector.extract_strided_slice %5 {offsets = [3, 0], sizes = [1, 512], strides = [1, 1]} : vector<8x512xf32> to vector<1x512xf32>
    %cst_21 = arith.constant dense<0.000000e+00> : vector<1x512xf32>
    %94 = tpu.matmul %92, %6, %cst_21 {dimension_numbers = #tpu.dot_dimension_numbers<[1], [0], [0], [1], [0, 0, 1, 1], [], []>} : vector<1x128xf32>, vector<128x512xf32>, vector<1x512xf32> -> vector<1x512xf32>
    %95 = arith.addf %93, %94 : vector<1x512xf32>
    %96 = vector.extract_strided_slice %95 {offsets = [0, 0], sizes = [1, 128], strides = [1, 1]} : vector<1x512xf32> to vector<1x128xf32>
    %97 = arith.negf %96 : vector<1x128xf32>
    %98 = math.exp %97 : vector<1x128xf32>
    %cst_22 = arith.constant 1.000000e+00 : f32
    %99 = vector.broadcast %cst_22 : f32 to vector<1x128xf32>
    %100 = arith.addf %99, %98 : vector<1x128xf32>
    %101 = arith.divf %99, %100 : vector<1x128xf32>
    %102 = vector.extract_strided_slice %95 {offsets = [0, 128], sizes = [1, 128], strides = [1, 1]} : vector<1x512xf32> to vector<1x128xf32>
    %103 = arith.negf %102 : vector<1x128xf32>
    %104 = math.exp %103 : vector<1x128xf32>
    %cst_23 = arith.constant 1.000000e+00 : f32
    %105 = vector.broadcast %cst_23 : f32 to vector<1x128xf32>
    %106 = arith.addf %105, %104 : vector<1x128xf32>
    %107 = arith.divf %105, %106 : vector<1x128xf32>
    %108 = vector.extract_strided_slice %95 {offsets = [0, 256], sizes = [1, 128], strides = [1, 1]} : vector<1x512xf32> to vector<1x128xf32>
    %109 = math.tanh %108 : vector<1x128xf32>
    %110 = vector.extract_strided_slice %95 {offsets = [0, 384], sizes = [1, 128], strides = [1, 1]} : vector<1x512xf32> to vector<1x128xf32>
    %111 = arith.negf %110 : vector<1x128xf32>
    %112 = math.exp %111 : vector<1x128xf32>
    %cst_24 = arith.constant 1.000000e+00 : f32
    %113 = vector.broadcast %cst_24 : f32 to vector<1x128xf32>
    %114 = arith.addf %113, %112 : vector<1x128xf32>
    %115 = arith.divf %113, %114 : vector<1x128xf32>
    %116 = arith.mulf %107, %90 : vector<1x128xf32>
    %117 = arith.mulf %101, %109 : vector<1x128xf32>
    %118 = arith.addf %116, %117 : vector<1x128xf32>
    %119 = math.tanh %118 : vector<1x128xf32>
    %120 = arith.mulf %115, %119 : vector<1x128xf32>
    %121 = vector.extract_strided_slice %5 {offsets = [4, 0], sizes = [1, 512], strides = [1, 1]} : vector<8x512xf32> to vector<1x512xf32>
    %cst_25 = arith.constant dense<0.000000e+00> : vector<1x512xf32>
    %122 = tpu.matmul %120, %6, %cst_25 {dimension_numbers = #tpu.dot_dimension_numbers<[1], [0], [0], [1], [0, 0, 1, 1], [], []>} : vector<1x128xf32>, vector<128x512xf32>, vector<1x512xf32> -> vector<1x512xf32>
    %123 = arith.addf %121, %122 : vector<1x512xf32>
    %124 = vector.extract_strided_slice %123 {offsets = [0, 0], sizes = [1, 128], strides = [1, 1]} : vector<1x512xf32> to vector<1x128xf32>
    %125 = arith.negf %124 : vector<1x128xf32>
    %126 = math.exp %125 : vector<1x128xf32>
    %cst_26 = arith.constant 1.000000e+00 : f32
    %127 = vector.broadcast %cst_26 : f32 to vector<1x128xf32>
    %128 = arith.addf %127, %126 : vector<1x128xf32>
    %129 = arith.divf %127, %128 : vector<1x128xf32>
    %130 = vector.extract_strided_slice %123 {offsets = [0, 128], sizes = [1, 128], strides = [1, 1]} : vector<1x512xf32> to vector<1x128xf32>
    %131 = arith.negf %130 : vector<1x128xf32>
    %132 = math.exp %131 : vector<1x128xf32>
    %cst_27 = arith.constant 1.000000e+00 : f32
    %133 = vector.broadcast %cst_27 : f32 to vector<1x128xf32>
    %134 = arith.addf %133, %132 : vector<1x128xf32>
    %135 = arith.divf %133, %134 : vector<1x128xf32>
    %136 = vector.extract_strided_slice %123 {offsets = [0, 256], sizes = [1, 128], strides = [1, 1]} : vector<1x512xf32> to vector<1x128xf32>
    %137 = math.tanh %136 : vector<1x128xf32>
    %138 = vector.extract_strided_slice %123 {offsets = [0, 384], sizes = [1, 128], strides = [1, 1]} : vector<1x512xf32> to vector<1x128xf32>
    %139 = arith.negf %138 : vector<1x128xf32>
    %140 = math.exp %139 : vector<1x128xf32>
    %cst_28 = arith.constant 1.000000e+00 : f32
    %141 = vector.broadcast %cst_28 : f32 to vector<1x128xf32>
    %142 = arith.addf %141, %140 : vector<1x128xf32>
    %143 = arith.divf %141, %142 : vector<1x128xf32>
    %144 = arith.mulf %135, %118 : vector<1x128xf32>
    %145 = arith.mulf %129, %137 : vector<1x128xf32>
    %146 = arith.addf %144, %145 : vector<1x128xf32>
    %147 = math.tanh %146 : vector<1x128xf32>
    %148 = arith.mulf %143, %147 : vector<1x128xf32>
    %149 = vector.extract_strided_slice %5 {offsets = [5, 0], sizes = [1, 512], strides = [1, 1]} : vector<8x512xf32> to vector<1x512xf32>
    %cst_29 = arith.constant dense<0.000000e+00> : vector<1x512xf32>
    %150 = tpu.matmul %148, %6, %cst_29 {dimension_numbers = #tpu.dot_dimension_numbers<[1], [0], [0], [1], [0, 0, 1, 1], [], []>} : vector<1x128xf32>, vector<128x512xf32>, vector<1x512xf32> -> vector<1x512xf32>
    %151 = arith.addf %149, %150 : vector<1x512xf32>
    %152 = vector.extract_strided_slice %151 {offsets = [0, 0], sizes = [1, 128], strides = [1, 1]} : vector<1x512xf32> to vector<1x128xf32>
    %153 = arith.negf %152 : vector<1x128xf32>
    %154 = math.exp %153 : vector<1x128xf32>
    %cst_30 = arith.constant 1.000000e+00 : f32
    %155 = vector.broadcast %cst_30 : f32 to vector<1x128xf32>
    %156 = arith.addf %155, %154 : vector<1x128xf32>
    %157 = arith.divf %155, %156 : vector<1x128xf32>
    %158 = vector.extract_strided_slice %151 {offsets = [0, 128], sizes = [1, 128], strides = [1, 1]} : vector<1x512xf32> to vector<1x128xf32>
    %159 = arith.negf %158 : vector<1x128xf32>
    %160 = math.exp %159 : vector<1x128xf32>
    %cst_31 = arith.constant 1.000000e+00 : f32
    %161 = vector.broadcast %cst_31 : f32 to vector<1x128xf32>
    %162 = arith.addf %161, %160 : vector<1x128xf32>
    %163 = arith.divf %161, %162 : vector<1x128xf32>
    %164 = vector.extract_strided_slice %151 {offsets = [0, 256], sizes = [1, 128], strides = [1, 1]} : vector<1x512xf32> to vector<1x128xf32>
    %165 = math.tanh %164 : vector<1x128xf32>
    %166 = vector.extract_strided_slice %151 {offsets = [0, 384], sizes = [1, 128], strides = [1, 1]} : vector<1x512xf32> to vector<1x128xf32>
    %167 = arith.negf %166 : vector<1x128xf32>
    %168 = math.exp %167 : vector<1x128xf32>
    %cst_32 = arith.constant 1.000000e+00 : f32
    %169 = vector.broadcast %cst_32 : f32 to vector<1x128xf32>
    %170 = arith.addf %169, %168 : vector<1x128xf32>
    %171 = arith.divf %169, %170 : vector<1x128xf32>
    %172 = arith.mulf %163, %146 : vector<1x128xf32>
    %173 = arith.mulf %157, %165 : vector<1x128xf32>
    %174 = arith.addf %172, %173 : vector<1x128xf32>
    %175 = math.tanh %174 : vector<1x128xf32>
    %176 = arith.mulf %171, %175 : vector<1x128xf32>
    %177 = vector.extract_strided_slice %5 {offsets = [6, 0], sizes = [1, 512], strides = [1, 1]} : vector<8x512xf32> to vector<1x512xf32>
    %cst_33 = arith.constant dense<0.000000e+00> : vector<1x512xf32>
    %178 = tpu.matmul %176, %6, %cst_33 {dimension_numbers = #tpu.dot_dimension_numbers<[1], [0], [0], [1], [0, 0, 1, 1], [], []>} : vector<1x128xf32>, vector<128x512xf32>, vector<1x512xf32> -> vector<1x512xf32>
    %179 = arith.addf %177, %178 : vector<1x512xf32>
    %180 = vector.extract_strided_slice %179 {offsets = [0, 0], sizes = [1, 128], strides = [1, 1]} : vector<1x512xf32> to vector<1x128xf32>
    %181 = arith.negf %180 : vector<1x128xf32>
    %182 = math.exp %181 : vector<1x128xf32>
    %cst_34 = arith.constant 1.000000e+00 : f32
    %183 = vector.broadcast %cst_34 : f32 to vector<1x128xf32>
    %184 = arith.addf %183, %182 : vector<1x128xf32>
    %185 = arith.divf %183, %184 : vector<1x128xf32>
    %186 = vector.extract_strided_slice %179 {offsets = [0, 128], sizes = [1, 128], strides = [1, 1]} : vector<1x512xf32> to vector<1x128xf32>
    %187 = arith.negf %186 : vector<1x128xf32>
    %188 = math.exp %187 : vector<1x128xf32>
    %cst_35 = arith.constant 1.000000e+00 : f32
    %189 = vector.broadcast %cst_35 : f32 to vector<1x128xf32>
    %190 = arith.addf %189, %188 : vector<1x128xf32>
    %191 = arith.divf %189, %190 : vector<1x128xf32>
    %192 = vector.extract_strided_slice %179 {offsets = [0, 256], sizes = [1, 128], strides = [1, 1]} : vector<1x512xf32> to vector<1x128xf32>
    %193 = math.tanh %192 : vector<1x128xf32>
    %194 = vector.extract_strided_slice %179 {offsets = [0, 384], sizes = [1, 128], strides = [1, 1]} : vector<1x512xf32> to vector<1x128xf32>
    %195 = arith.negf %194 : vector<1x128xf32>
    %196 = math.exp %195 : vector<1x128xf32>
    %cst_36 = arith.constant 1.000000e+00 : f32
    %197 = vector.broadcast %cst_36 : f32 to vector<1x128xf32>
    %198 = arith.addf %197, %196 : vector<1x128xf32>
    %199 = arith.divf %197, %198 : vector<1x128xf32>
    %200 = arith.mulf %191, %174 : vector<1x128xf32>
    %201 = arith.mulf %185, %193 : vector<1x128xf32>
    %202 = arith.addf %200, %201 : vector<1x128xf32>
    %203 = math.tanh %202 : vector<1x128xf32>
    %204 = arith.mulf %199, %203 : vector<1x128xf32>
    %205 = vector.extract_strided_slice %5 {offsets = [7, 0], sizes = [1, 512], strides = [1, 1]} : vector<8x512xf32> to vector<1x512xf32>
    %cst_37 = arith.constant dense<0.000000e+00> : vector<1x512xf32>
    %206 = tpu.matmul %204, %6, %cst_37 {dimension_numbers = #tpu.dot_dimension_numbers<[1], [0], [0], [1], [0, 0, 1, 1], [], []>} : vector<1x128xf32>, vector<128x512xf32>, vector<1x512xf32> -> vector<1x512xf32>
    %207 = arith.addf %205, %206 : vector<1x512xf32>
    %208 = vector.extract_strided_slice %207 {offsets = [0, 0], sizes = [1, 128], strides = [1, 1]} : vector<1x512xf32> to vector<1x128xf32>
    %209 = arith.negf %208 : vector<1x128xf32>
    %210 = math.exp %209 : vector<1x128xf32>
    %cst_38 = arith.constant 1.000000e+00 : f32
    %211 = vector.broadcast %cst_38 : f32 to vector<1x128xf32>
    %212 = arith.addf %211, %210 : vector<1x128xf32>
    %213 = arith.divf %211, %212 : vector<1x128xf32>
    %214 = vector.extract_strided_slice %207 {offsets = [0, 128], sizes = [1, 128], strides = [1, 1]} : vector<1x512xf32> to vector<1x128xf32>
    %215 = arith.negf %214 : vector<1x128xf32>
    %216 = math.exp %215 : vector<1x128xf32>
    %cst_39 = arith.constant 1.000000e+00 : f32
    %217 = vector.broadcast %cst_39 : f32 to vector<1x128xf32>
    %218 = arith.addf %217, %216 : vector<1x128xf32>
    %219 = arith.divf %217, %218 : vector<1x128xf32>
    %220 = vector.extract_strided_slice %207 {offsets = [0, 256], sizes = [1, 128], strides = [1, 1]} : vector<1x512xf32> to vector<1x128xf32>
    %221 = math.tanh %220 : vector<1x128xf32>
    %222 = vector.extract_strided_slice %207 {offsets = [0, 384], sizes = [1, 128], strides = [1, 1]} : vector<1x512xf32> to vector<1x128xf32>
    %223 = arith.negf %222 : vector<1x128xf32>
    %224 = math.exp %223 : vector<1x128xf32>
    %cst_40 = arith.constant 1.000000e+00 : f32
    %225 = vector.broadcast %cst_40 : f32 to vector<1x128xf32>
    %226 = arith.addf %225, %224 : vector<1x128xf32>
    %227 = arith.divf %225, %226 : vector<1x128xf32>
    %228 = arith.mulf %219, %202 : vector<1x128xf32>
    %229 = arith.mulf %213, %221 : vector<1x128xf32>
    %230 = arith.addf %228, %229 : vector<1x128xf32>
    %231 = math.tanh %230 : vector<1x128xf32>
    %232 = arith.mulf %227, %231 : vector<1x128xf32>
    %c0_41 = arith.constant 0 : index
    %c0_42 = arith.constant 0 : index
    %233 = vector.load %arg4[%c0_41, %c0_42] : memref<1x128xf32, #tpu.memory_space<vmem>>, vector<1x128xf32>
    %234 = arith.mulf %232, %233 : vector<1x128xf32>
    %cst_43 = arith.constant dense<0.000000e+00> : vector<1xf32>
    %235 = vector.multi_reduction <add>, %234, %cst_43 [1] : vector<1x128xf32> to vector<1xf32>
    %236 = vector.shape_cast %235 : vector<1xf32> to vector<1x1xf32>
    %c0_44 = arith.constant 0 : index
    %c0_45 = arith.constant 0 : index
    %237 = vector.load %arg5[%c0_44, %c0_45] : memref<1x1xf32, #tpu.memory_space<vmem>>, vector<1x1xf32>
    %238 = arith.addf %236, %237 : vector<1x1xf32>
    %c0_46 = arith.constant 0 : index
    %c0_47 = arith.constant 0 : index
    %239 = vector.load %arg6[%c0_46, %c0_47] : memref<1x1xf32, #tpu.memory_space<vmem>>, vector<1x1xf32>
    tpu.vector_store %arg6[%c0_46, %c0_47], %238 {strides = array<i32>} : memref<1x1xf32, #tpu.memory_space<vmem>>, vector<1x1xf32>,
    return
  }
}

</mosaic_0001>

<bundles_post_ra>
// kernel: tpu_custom_call.1
= control target key start
LH: loop header
LB: loop body
LE: loop exit
PB: predicated region body
PF: predicated region fallthrough
CT: control target
= control target key end

     0   :  { %s2820_s0 = inlined_call_operand.hbm [shape: f32[8,5], index: 0, kind: input, shape index: {}]   ;;  %s2821_s1 = inlined_call_operand.hbm [shape: f32[5,512], index: 1, kind: input, shape index: {}]   ;;  %s2822_s2 = inlined_call_operand.hbm [shape: f32[128,512], index: 2, kind: input, shape index: {}]   ;;  %s2823_s3 = inlined_call_operand.vmem [shape: f32[1,512], index: 3, kind: input, shape index: {}]   ;;  %s2824_s4 = inlined_call_operand.vmem [shape: f32[1,128], index: 4, kind: input, shape index: {}]   ;;  %s2825_s5 = inlined_call_operand.<no memory space> [shape: f32[1,1], index: 5, kind: input, shape index: {}]   ;;  %s2826_s6 = inlined_call_operand.hbm [shape: f32[1,1], index: 6, kind: output, shape index: {}]  }
   0x1   :  { %v11_v0 = vstv %s2825_s5 }
   0x2   :  { %12 = vst [vmem:[#allocation2] sm:$0x1] %v11_v0 }
   0x3   :  { %13 = vsyncpa [#allocation4], 0 }
   0x4   :  { %14 = vsyncpa [#allocation7], 0  ;;  %s32_s25 = sshll.u32 %s2821_s1, 4  ;;  %s33_s25 = int_to_ptr.hbm [resolvable:$true] %s32_s25 }
   0x5   :  { %15 = vsyncpa [#allocation5], 0  ;;  %s1913_s26 = smov [#allocation6]   ;;  %s21_s30 = sshll.u32 %s2820_s0, 4  ;;  %s22_s30 = int_to_ptr.hbm [resolvable:$true] %s21_s30 }
   0x6   :  { %s34_s27 = sshll.u32 %s1913_s26, 4  ;;  %s1914_s7 = smov [#allocation3]   ;;  %s35_s27 = int_to_ptr.vmem [resolvable:$true] %s34_s27 }
   0x7   :  { %37 = dma.hbm_to_vmem [thread:$0]  %s33_s25, 512, %s35_s27, [#allocation7]  }
   0x8   :  { %s23_s5 = sshll.u32 %s1914_s7, 4  ;;  %s42_s10 = sshll.u32 %s2822_s2, 4  ;;  %s24_s5 = int_to_ptr.vmem [resolvable:$true] %s23_s5  ;;  %s43_s10 = int_to_ptr.hbm [resolvable:$true] %s42_s10 }
   0x9   :  { %26 = dma.hbm_to_vmem [thread:$0]  %s22_s30, 128, %s24_s5, [#allocation4]  }
   0xa   :  { %s1915_s1 = smov [#allocation8]   ;;  %s1916_s12 = smov 512  }
   0xb   :  { %s44_s11 = sshll.u32 %s1915_s1, 4  ;;  %s1917_s13 = smov 32   ;;  %s45_s11 = int_to_ptr.vmem [resolvable:$true] %s44_s11 }
   0xc   :  { %50 = dma.hbm_to_vmem [thread:$0]  %s43_s10, 8192, %s45_s11, [#allocation7], %s1916_s12, %s1916_s12, %s1917_s13  }
   0xd   :  { %1907 = dma.done.wait [#allocation4], 128  }
   0xe   :  { %1908 = vsyncadd [#allocation4], 4294967168 }
   0xf   :  { %1909 = dma.done.wait [#allocation7], 8704  }
  0x10   :  { %1910 = vsyncadd [#allocation7], 4294958592  ;;  %vm88_vm0 = vcmask 1044480   ;;  %v70_v1 = vld [vmem:[#allocation6] sm:$0x1f]  ;;  %v1971_v5 = vld [vmem:[#allocation8 + $0x1e8] sm:$0xff] }
  0x11   :  { %v71_v2 = vld [vmem:[#allocation6 + $0x8] sm:$0x1f]  ;;  %v73_v3 = vld [vmem:[#allocation6 + $0x18] sm:$0x1f]  ;;  %1578 = vmatpush.msk.msra.mxu0 %vm88_vm0, %v70_v1  ;;  %v1969_v4 = vld [vmem:[#allocation8 + $0x1e0] sm:$0xff]  ;;  %vm84_vm1 = vcmask 39936  }
  0x12   :  { %1580 = vmatpush.msk.msra.mxu1 %vm88_vm0, %v71_v2  ;;  %v1973_v6 = vld [vmem:[#allocation8 + $0x1f8] sm:$0xff]  ;;  %1584 = vmatpush.msk.msra.mxu3 %vm88_vm0, %v73_v3  ;;  %v1977_v7 = vld [vmem:[#allocation8 + $0x1c0] sm:$0xff]  ;;  %v1979_v8 = vld [vmem:[#allocation8 + $0x1c8] sm:$0xff]  ;;  %v1918_v2 = vmov 0.0   ;;  %s1919_s15 = smov [#allocation9]   ;;  %s1567_s19 = sshll.u32 %s2826_s6, 4  ;;  %s1568_s19 = int_to_ptr.hbm [resolvable:$true] %s1567_s19 }
  0x13   :  { %245 = vmatpush.msrb.mxu0 %v1969_v4  ;;  %v1981_v9 = vld [vmem:[#allocation8 + $0x1d8] sm:$0xff]  ;;  %v1985_v10 = vld [vmem:[#allocation8 + $0x1a0] sm:$0xff]  ;;  %v1988_v11 = vld [vmem:[#allocation8 + $0x1a8] sm:$0xff]  ;;  %s1565_s16 = sshll.u32 %s1919_s15, 4  ;;  %s1566_s16 = int_to_ptr.vmem [resolvable:$true] %s1565_s16 }
  0x14   :  { %265 = vmatpush.msrb.mxu1 %v1971_v5  ;;  %305 = vmatpush.msrb.mxu3 %v1973_v6  ;;  %v1990_v12 = vld [vmem:[#allocation8 + $0x1b8] sm:$0xff]  ;;  %v1994_v13 = vld [vmem:[#allocation8 + $0x180] sm:$0xff]  ;;  %v72_v14 = vld [vmem:[#allocation6 + $0x10] sm:$0x1f] }
  0x15   :  { %246 = vmatpush.msrb.mxu0 %v1977_v7  ;;  %v1997_v15 = vld [vmem:[#allocation8 + $0x188] sm:$0xff]  ;;  %v1999_v16 = vld [vmem:[#allocation8 + $0x198] sm:$0xff]  ;;  %1582 = vmatpush.msk.msra.mxu2 %vm88_vm0, %v72_v14  ;;  %v2002_v17 = vld [vmem:[#allocation8 + $0x1f0] sm:$0xff] }
  0x16   :  { %266 = vmatpush.msrb.mxu1 %v1979_v8  ;;  %306 = vmatpush.msrb.mxu3 %v1981_v9  ;;  %v2006_v18 = vld [vmem:[#allocation8 + $0x160] sm:$0xff]  ;;  %v2008_v19 = vld [vmem:[#allocation8 + $0x1d0] sm:$0xff]  ;;  %v2011_v20 = vld [vmem:[#allocation8 + $0x168] sm:$0xff] }
  0x17   :  { %247 = vmatpush.msrb.mxu0 %v1985_v10  ;;  %v2013_v21 = vld [vmem:[#allocation8 + $0x178] sm:$0xff]  ;;  %285 = vmatpush.msrb.mxu2 %v2002_v17  ;;  %v2018_v22 = vld [vmem:[#allocation8 + $0x140] sm:$0xff]  ;;  %v2020_v23 = vld [vmem:[#allocation8 + $0x1b0] sm:$0xff] }
  0x18   :  { %267 = vmatpush.msrb.mxu1 %v1988_v11  ;;  %307 = vmatpush.msrb.mxu3 %v1990_v12  ;;  %v2023_v24 = vld [vmem:[#allocation8 + $0x148] sm:$0xff]  ;;  %v2025_v25 = vld [vmem:[#allocation8 + $0x158] sm:$0xff]  ;;  %v2030_v26 = vld [vmem:[#allocation8 + $0x120] sm:$0xff] }
  0x19   :  { %248 = vmatpush.msrb.mxu0 %v1994_v13  ;;  %286 = vmatpush.msrb.mxu2 %v2008_v19  ;;  %v2032_v27 = vld [vmem:[#allocation8 + $0x190] sm:$0xff]  ;;  %v2035_v28 = vld [vmem:[#allocation8 + $0x128] sm:$0xff]  ;;  %v2037_v29 = vld [vmem:[#allocation8 + $0x138] sm:$0xff] }
  0x1a   :  { %268 = vmatpush.msrb.mxu1 %v1997_v15  ;;  %308 = vmatpush.msrb.mxu3 %v1999_v16  ;;  %v2042_v30 = vld [vmem:[#allocation8 + $0x100] sm:$0xff]  ;;  %v2044_v31 = vld [vmem:[#allocation8 + $0x170] sm:$0xff]  ;;  %v2047_v32 = vld [vmem:[#allocation8 + $0x108] sm:$0xff] }
  0x1b   :  { %249 = vmatpush.msrb.mxu0 %v2006_v18  ;;  %287 = vmatpush.msrb.mxu2 %v2020_v23  ;;  %v2049_v33 = vld [vmem:[#allocation8 + $0x118] sm:$0xff]  ;;  %v2054_v34 = vld [vmem:[#allocation8 + $0xe0] sm:$0xff]  ;;  %v2056_v35 = vld [vmem:[#allocation8 + $0x150] sm:$0xff] }
  0x1c   :  { %269 = vmatpush.msrb.mxu1 %v2011_v20  ;;  %309 = vmatpush.msrb.mxu3 %v2013_v21  ;;  %v2059_v36 = vld [vmem:[#allocation8 + $0xe8] sm:$0xff]  ;;  %v2061_v37 = vld [vmem:[#allocation8 + $0xf8] sm:$0xff]  ;;  %v2066_v38 = vld [vmem:[#allocation8 + $0xc0] sm:$0xff] }
  0x1d   :  { %250 = vmatpush.msrb.mxu0 %v2018_v22  ;;  %288 = vmatpush.msrb.mxu2 %v2032_v27  ;;  %v2068_v39 = vld [vmem:[#allocation8 + $0x130] sm:$0xff]  ;;  %v2071_v40 = vld [vmem:[#allocation8 + $0xc8] sm:$0xff]  ;;  %v2073_v41 = vld [vmem:[#allocation8 + $0xd8] sm:$0xff] }
  0x1e   :  { %270 = vmatpush.msrb.mxu1 %v2023_v24  ;;  %310 = vmatpush.msrb.mxu3 %v2025_v25  ;;  %2944 = vst [vmem:[#allocation13_spill] sm:$0xff] %v2073_v41  ;;  %v2078_v42 = vld [vmem:[#allocation8 + $0xa0] sm:$0xff]  ;;  %v69_v43 = vld [vmem:[#allocation3] sm:$0xff]  ;;  %v2081_v44 = vld [vmem:[#allocation8 + $0xa8] sm:$0xff] }
  0x1f   :  { %251 = vmatpush.msrb.mxu0 %v2030_v26  ;;  %289 = vmatpush.msrb.mxu2 %v2044_v31  ;;  %2945 = vst [vmem:[#allocation14_spill] sm:$0xff] %v2078_v42  ;;  %v2083_v45 = vld [vmem:[#allocation8 + $0xb8] sm:$0xff]  ;;  %v2088_v46 = vld [vmem:[#allocation8 + $0x80] sm:$0xff]  ;;  %v2091_v47 = vld [vmem:[#allocation8 + $0x88] sm:$0xff] }
  0x20   :  { %271 = vmatpush.msrb.mxu1 %v2035_v28  ;;  %311 = vmatpush.msrb.mxu3 %v2037_v29  ;;  %2946 = vst [vmem:[#allocation15_spill] sm:$0xff] %v2081_v44  ;;  %v2093_v48 = vld [vmem:[#allocation8 + $0x98] sm:$0xff]  ;;  %v2098_v49 = vld [vmem:[#allocation8 + $0x110] sm:$0xff]  ;;  %v2102_v50 = vld [vmem:[#allocation8 + $0x60] sm:$0xff] }
  0x21   :  { %252 = vmatpush.msrb.mxu0 %v2042_v30  ;;  %290 = vmatpush.msrb.mxu2 %v2056_v35  ;;  %2947 = vst [vmem:[#allocation16_spill] sm:$0xff] %v2083_v45  ;;  %v2104_v51 = vld [vmem:[#allocation8 + $0x68] sm:$0xff]  ;;  %v2108_v52 = vld [vmem:[#allocation8 + $0x78] sm:$0xff]  ;;  %v2110_v53 = vld [vmem:[#allocation8 + $0xf0] sm:$0xff] }
  0x22   :  { %272 = vmatpush.msrb.mxu1 %v2047_v32  ;;  %312 = vmatpush.msrb.mxu3 %v2049_v33  ;;  %2948 = vst [vmem:[#allocation17_spill] sm:$0xff] %v2088_v46  ;;  %v2114_v54 = vld [vmem:[#allocation8 + $0x40] sm:$0xff]  ;;  %v2116_v55 = vld [vmem:[#allocation8 + $0x48] sm:$0xff]  ;;  %v2120_v56 = vld [vmem:[#allocation8 + $0x58] sm:$0xff] }
  0x23   :  { %253 = vmatpush.msrb.mxu0 %v2054_v34  ;;  %291 = vmatpush.msrb.mxu2 %v2068_v39  ;;  %2949 = vst [vmem:[#allocation18_spill] sm:$0xff] %v2091_v47  ;;  %v2122_v57 = vld [vmem:[#allocation8 + $0xd0] sm:$0xff]  ;;  %v2126_v58 = vld [vmem:[#allocation8 + $0x20] sm:$0xff]  ;;  %v2128_v59 = vld [vmem:[#allocation8 + $0x28] sm:$0xff] }
  0x24   :  { %273 = vmatpush.msrb.mxu1 %v2059_v36  ;;  %313 = vmatpush.msrb.mxu3 %v2061_v37  ;;  %2950 = vst [vmem:[#allocation19_spill] sm:$0xff] %v2093_v48  ;;  %v2132_v60 = vld [vmem:[#allocation8 + $0x38] sm:$0xff]  ;;  %v2134_v61 = vld [vmem:[#allocation8 + $0xb0] sm:$0xff]  ;;  %v2138_v62 = vld [vmem:[#allocation8] sm:$0xff] }
  0x25   :  { %254 = vmatpush.msrb.mxu0 %v2066_v38  ;;  %1581 = vmatmul.msk.f32.vlgmr.msra.gmra.mxu1 %vm84_vm1, %v69_v43  ;;  %2951 = vst [vmem:[#allocation20_spill] sm:$0xff] %v2102_v50  ;;  %v2140_v63 = vld [vmem:[#allocation8 + $0x8] sm:$0xff]  ;;  %v2144_v0 = vld [vmem:[#allocation8 + $0x18] sm:$0xff]  ;;  %v2148_v1 = vld [vmem:[#allocation8 + $0x90] sm:$0xff] }
  0x26   :  { %274 = vmatpush.msrb.mxu1 %v2071_v40  ;;  %314 = vmatpush.msrb.mxu3 %v2073_v41  ;;  %2952 = vst [vmem:[#allocation21_spill] sm:$0xff] %v2104_v51  ;;  %v2153_v3 = vld [vmem:[#allocation8 + $0x70] sm:$0xff] }
  0x27   :  { %255 = vmatpush.msrb.mxu0 %v2078_v42  ;;  %1585 = vmatmul.msk.f32.vlgmr.msra.gmra.mxu3 %vm84_vm1, %v69_v43  ;;  %2953 = vst [vmem:[#allocation22_spill] sm:$0xff] %v2108_v52  ;;  %v2157_v14 = vld [vmem:[#allocation8 + $0x50] sm:$0xff] }
  0x28   :  { %275 = vmatpush.msrb.mxu1 %v2081_v44  ;;  %315 = vmatpush.msrb.mxu3 %v2083_v45  ;;  %2954 = vst [vmem:[#allocation23_spill] sm:$0xff] %v2114_v54 }
  0x29   :  { %256 = vmatpush.msrb.mxu0 %v2088_v46  ;;  %292 = vmatpush.msrb.mxu2 %v2098_v49  ;;  %2955 = vst [vmem:[#allocation24_spill] sm:$0xff] %v2116_v55 }
  0x2a   :  { %276 = vmatpush.msrb.mxu1 %v2091_v47  ;;  %316 = vmatpush.msrb.mxu3 %v2093_v48  ;;  %2956 = vst [vmem:[#allocation25_spill] sm:$0xff] %v2120_v56 }
  0x2b   :  { %1579 = vmatmul.msk.f32.vlgmr.msra.gmra.mxu0 %vm84_vm1, %v69_v43  ;;  %2957 = vst [vmem:[#allocation26_spill] sm:$0xff] %v2122_v57  ;;  %293 = vmatpush.msrb.mxu2 %v2110_v53 }
  0x2c   :  { %257 = vmatpush.msrb.mxu0 %v2102_v50  ;;  %277 = vmatpush.msrb.mxu1 %v2104_v51  ;;  %2958 = vst [vmem:[#allocation27_spill] sm:$0xff] %v2126_v58 }
  0x2d   :  { %317 = vmatpush.msrb.mxu3 %v2108_v52  ;;  %2959 = vst [vmem:[#allocation28_spill] sm:$0xff] %v2128_v59  ;;  %294 = vmatpush.msrb.mxu2 %v2122_v57 }
  0x2e   :  { %258 = vmatpush.msrb.mxu0 %v2114_v54  ;;  %278 = vmatpush.msrb.mxu1 %v2116_v55  ;;  %2960 = vst [vmem:[#allocation29_spill] sm:$0xff] %v2132_v60 }
  0x2f   :  { %2961 = vst [vmem:[#allocation30_spill] sm:$0xff] %v2134_v61  ;;  %318 = vmatpush.msrb.mxu3 %v2120_v56  ;;  %295 = vmatpush.msrb.mxu2 %v2134_v61 }
  0x30   :  { %2962 = vst [vmem:[#allocation31_spill] sm:$0xff] %v2138_v62  ;;  %259 = vmatpush.msrb.mxu0 %v2126_v58  ;;  %279 = vmatpush.msrb.mxu1 %v2128_v59 }
  0x31   :  { %2963 = vst [vmem:[#allocation32_spill] sm:$0xff] %v2140_v63  ;;  %319 = vmatpush.msrb.mxu3 %v2132_v60  ;;  %296 = vmatpush.msrb.mxu2 %v2148_v1 }
  0x32   :  { %2964 = vst [vmem:[#allocation33_spill] sm:$0xff] %v2144_v0  ;;  %260 = vmatpush.msrb.mxu0 %v2138_v62  ;;  %280 = vmatpush.msrb.mxu1 %v2140_v63  ;;  %v2161_v62 = vld [vmem:[#allocation8 + $0x30] sm:$0xff] }
  0x33   :  { %2965 = vst [vmem:[#allocation34_spill] sm:$0xff] %v2148_v1  ;;  %320 = vmatpush.msrb.mxu3 %v2144_v0  ;;  %261 = vmatmul.f32.vlgmr.msrb.gmra.mxu0 %v1918_v2  ;;  %v2167_v0 = vld [vmem:[#allocation8 + $0x10] sm:$0xff] }
  0x34   :  { %2966 = vst [vmem:[#allocation35_spill] sm:$0xff] %v2153_v3  ;;  %281 = vmatmul.f32.vlgmr.msrb.gmra.mxu1 %v1918_v2  ;;  %321 = vmatmul.f32.vlgmr.msrb.gmra.mxu3 %v1918_v2 }
  0x35   :  { %1583 = vmatmul.msk.f32.vlgmr.msra.gmra.mxu2 %vm84_vm1, %v69_v43  ;;  %2967 = vst [vmem:[#allocation36_spill] sm:$0xff] %v2157_v14  ;;  %392 = vmatpush.msra.mxu0 %v1969_v4 }
  0x36   :  { %297 = vmatpush.msrb.mxu2 %v2153_v3  ;;  %2968 = vst [vmem:[#allocation37_spill] sm:$0xff] %v2161_v62  ;;  %412 = vmatpush.msra.mxu1 %v1971_v5 }
  0x37   :  { %452 = vmatpush.msra.mxu3 %v1973_v6  ;;  %393 = vmatpush.msra.mxu0 %v1977_v7  ;;  %2969 = vst [vmem:[#allocation38_spill] sm:$0xff] %v2167_v0  ;;  %v2970_v43 = vld [vmem:[#allocation31_spill] sm:$0xff] }
  0x38   :  { %298 = vmatpush.msrb.mxu2 %v2157_v14  ;;  %413 = vmatpush.msra.mxu1 %v1979_v8 }
  0x39   :  { %453 = vmatpush.msra.mxu3 %v1981_v9  ;;  %394 = vmatpush.msra.mxu0 %v1985_v10 }
  0x3a   :  { %299 = vmatpush.msrb.mxu2 %v2161_v62  ;;  %414 = vmatpush.msra.mxu1 %v1988_v11 }
  0x3b   :  { %454 = vmatpush.msra.mxu3 %v1990_v12  ;;  %395 = vmatpush.msra.mxu0 %v1994_v13 }
  0x3c   :  { %300 = vmatpush.msrb.mxu2 %v2167_v0  ;;  %415 = vmatpush.msra.mxu1 %v1997_v15 }
  0x3d   :  { %301 = vmatmul.f32.vlgmr.msrb.gmra.mxu2 %v1918_v2  ;;  %455 = vmatpush.msra.mxu3 %v1999_v16  ;;  %v2971_v2 = vld [vmem:[#allocation33_spill] sm:$0xff] }
  0x3e   :  { %432 = vmatpush.msra.mxu2 %v2002_v17  ;;  %396 = vmatpush.msra.mxu0 %v2006_v18 }
  0x3f   :  { %416 = vmatpush.msra.mxu1 %v2011_v20  ;;  %456 = vmatpush.msra.mxu3 %v2013_v21 }
  0x40   :  { %433 = vmatpush.msra.mxu2 %v2008_v19  ;;  %397 = vmatpush.msra.mxu0 %v2018_v22 }
  0x41   :  { %417 = vmatpush.msra.mxu1 %v2023_v24  ;;  %457 = vmatpush.msra.mxu3 %v2025_v25 }
  0x42   :  { %434 = vmatpush.msra.mxu2 %v2020_v23  ;;  %398 = vmatpush.msra.mxu0 %v2030_v26 }
  0x43   :  { %418 = vmatpush.msra.mxu1 %v2035_v28  ;;  %458 = vmatpush.msra.mxu3 %v2037_v29 }
  0x44   :  { %435 = vmatpush.msra.mxu2 %v2032_v27  ;;  %399 = vmatpush.msra.mxu0 %v2042_v30 }
  0x45   :  { %419 = vmatpush.msra.mxu1 %v2047_v32  ;;  %459 = vmatpush.msra.mxu3 %v2049_v33 }
  0x46   :  { %436 = vmatpush.msra.mxu2 %v2044_v31  ;;  %400 = vmatpush.msra.mxu0 %v2054_v34 }
  0x47   :  { %420 = vmatpush.msra.mxu1 %v2059_v36  ;;  %460 = vmatpush.msra.mxu3 %v2061_v37 }
  0x48   :  { %437 = vmatpush.msra.mxu2 %v2056_v35  ;;  %401 = vmatpush.msra.mxu0 %v2066_v38 }
  0x49   :  { %421 = vmatpush.msra.mxu1 %v2071_v40  ;;  %461 = vmatpush.msra.mxu3 %v2073_v41 }
  0x4a   :  { %438 = vmatpush.msra.mxu2 %v2068_v39  ;;  %402 = vmatpush.msra.mxu0 %v2078_v42 }
  0x4b   :  { %422 = vmatpush.msra.mxu1 %v2081_v44  ;;  %462 = vmatpush.msra.mxu3 %v2083_v45 }
  0x4c   :  { %439 = vmatpush.msra.mxu2 %v2098_v49  ;;  %403 = vmatpush.msra.mxu0 %v2088_v46 }
  0x4d   :  { %423 = vmatpush.msra.mxu1 %v2091_v47  ;;  %463 = vmatpush.msra.mxu3 %v2093_v48 }
  0x4e   :  { %440 = vmatpush.msra.mxu2 %v2110_v53  ;;  %404 = vmatpush.msra.mxu0 %v2102_v50 }
  0x4f   :  { %424 = vmatpush.msra.mxu1 %v2104_v51  ;;  %464 = vmatpush.msra.mxu3 %v2108_v52 }
  0x50   :  { %441 = vmatpush.msra.mxu2 %v2122_v57  ;;  %405 = vmatpush.msra.mxu0 %v2114_v54 }
  0x51   :  { %425 = vmatpush.msra.mxu1 %v2116_v55  ;;  %465 = vmatpush.msra.mxu3 %v2120_v56 }
  0x52   :  { %442 = vmatpush.msra.mxu2 %v2134_v61  ;;  %406 = vmatpush.msra.mxu0 %v2126_v58 }
  0x53   :  { %426 = vmatpush.msra.mxu1 %v2128_v59  ;;  %466 = vmatpush.msra.mxu3 %v2132_v60 }
  0x54   :  { %443 = vmatpush.msra.mxu2 %v2148_v1  ;;  %407 = vmatpush.msra.mxu0 %v2970_v43 }
  0x55   :  { %427 = vmatpush.msra.mxu1 %v2140_v63  ;;  %467 = vmatpush.msra.mxu3 %v2971_v2 }
  0x56   :  { %444 = vmatpush.msra.mxu2 %v2153_v3  ;;  %557 = vmatpush.msrb.mxu0 %v1969_v4 }
  0x57   :  { %577 = vmatpush.msrb.mxu1 %v1971_v5  ;;  %617 = vmatpush.msrb.mxu3 %v1973_v6 }
  0x58   :  { %445 = vmatpush.msra.mxu2 %v2157_v14  ;;  %558 = vmatpush.msrb.mxu0 %v1977_v7 }
  0x59   :  { %578 = vmatpush.msrb.mxu1 %v1979_v8  ;;  %618 = vmatpush.msrb.mxu3 %v1981_v9 }
  0x5a   :  { %446 = vmatpush.msra.mxu2 %v2161_v62  ;;  %559 = vmatpush.msrb.mxu0 %v1985_v10 }
  0x5b   :  { %579 = vmatpush.msrb.mxu1 %v1988_v11  ;;  %619 = vmatpush.msrb.mxu3 %v1990_v12 }
  0x5c   :  { %447 = vmatpush.msra.mxu2 %v2167_v0  ;;  %560 = vmatpush.msrb.mxu0 %v1994_v13 }
  0x5d   :  { %580 = vmatpush.msrb.mxu1 %v1997_v15  ;;  %620 = vmatpush.msrb.mxu3 %v1999_v16 }
  0x5e   :  { %597 = vmatpush.msrb.mxu2 %v2002_v17  ;;  %561 = vmatpush.msrb.mxu0 %v2006_v18 }
  0x5f   :  { %581 = vmatpush.msrb.mxu1 %v2011_v20  ;;  %621 = vmatpush.msrb.mxu3 %v2013_v21 }
  0x60   :  { %598 = vmatpush.msrb.mxu2 %v2008_v19  ;;  %562 = vmatpush.msrb.mxu0 %v2018_v22 }
  0x61   :  { %582 = vmatpush.msrb.mxu1 %v2023_v24  ;;  %622 = vmatpush.msrb.mxu3 %v2025_v25 }
  0x62   :  { %599 = vmatpush.msrb.mxu2 %v2020_v23  ;;  %563 = vmatpush.msrb.mxu0 %v2030_v26 }
  0x63   :  { %583 = vmatpush.msrb.mxu1 %v2035_v28  ;;  %623 = vmatpush.msrb.mxu3 %v2037_v29 }
  0x64   :  { %600 = vmatpush.msrb.mxu2 %v2032_v27  ;;  %564 = vmatpush.msrb.mxu0 %v2042_v30 }
  0x65   :  { %584 = vmatpush.msrb.mxu1 %v2047_v32  ;;  %624 = vmatpush.msrb.mxu3 %v2049_v33 }
  0x66   :  { %601 = vmatpush.msrb.mxu2 %v2044_v31  ;;  %565 = vmatpush.msrb.mxu0 %v2054_v34 }
  0x67   :  { %585 = vmatpush.msrb.mxu1 %v2059_v36  ;;  %625 = vmatpush.msrb.mxu3 %v2061_v37 }
  0x68   :  { %602 = vmatpush.msrb.mxu2 %v2056_v35  ;;  %566 = vmatpush.msrb.mxu0 %v2066_v38 }
  0x69   :  { %586 = vmatpush.msrb.mxu1 %v2071_v40  ;;  %626 = vmatpush.msrb.mxu3 %v2073_v41 }
  0x6a   :  { %603 = vmatpush.msrb.mxu2 %v2068_v39  ;;  %567 = vmatpush.msrb.mxu0 %v2078_v42 }
  0x6b   :  { %587 = vmatpush.msrb.mxu1 %v2081_v44  ;;  %627 = vmatpush.msrb.mxu3 %v2083_v45 }
  0x6c   :  { %604 = vmatpush.msrb.mxu2 %v2098_v49  ;;  %568 = vmatpush.msrb.mxu0 %v2088_v46 }
  0x6d   :  { %588 = vmatpush.msrb.mxu1 %v2091_v47  ;;  %628 = vmatpush.msrb.mxu3 %v2093_v48 }
  0x6e   :  { %605 = vmatpush.msrb.mxu2 %v2110_v53  ;;  %569 = vmatpush.msrb.mxu0 %v2102_v50 }
  0x6f   :  { %589 = vmatpush.msrb.mxu1 %v2104_v51  ;;  %629 = vmatpush.msrb.mxu3 %v2108_v52 }
  0x70   :  { %606 = vmatpush.msrb.mxu2 %v2122_v57  ;;  %570 = vmatpush.msrb.mxu0 %v2114_v54 }
  0x71   :  { %590 = vmatpush.msrb.mxu1 %v2116_v55  ;;  %630 = vmatpush.msrb.mxu3 %v2120_v56 }
  0x72   :  { %607 = vmatpush.msrb.mxu2 %v2134_v61  ;;  %571 = vmatpush.msrb.mxu0 %v2126_v58 }
  0x73   :  { %591 = vmatpush.msrb.mxu1 %v2128_v59  ;;  %631 = vmatpush.msrb.mxu3 %v2132_v60  ;;  %v74_v59 = vld [vmem:[%s2823_s3] sm:$0xf] }
  0x74   :  { %608 = vmatpush.msrb.mxu2 %v2148_v1  ;;  %572 = vmatpush.msrb.mxu0 %v2970_v43  ;;  %v76_v58 = vperm.slane %v74_v59, 0  ;;  %v77_v55 = vperm.slane %v74_v59, 1  ;;  %v79_v52 = vperm.slane %v74_v59, 3  ;;  %v78_v46 = vperm.slane %v74_v59, 2 }
  0x75   :  { %592 = vmatpush.msrb.mxu1 %v2140_v63  ;;  %632 = vmatpush.msrb.mxu3 %v2971_v2 }
  0x76   :  { %609 = vmatpush.msrb.mxu2 %v2153_v3 }
  0x78   :  { %610 = vmatpush.msrb.mxu2 %v2157_v14 }
  0x7a   :  { %611 = vmatpush.msrb.mxu2 %v2161_v62 }
  0x7c   :  { %612 = vmatpush.msrb.mxu2 %v2167_v0 }
  0xa2   :  { %v138_v56 = vpop.f32.mrf.mxu1 }
  0xa3   :  { %v2300_v63 = vadd.f32 %v138_v56, %v77_v55 }
  0xa5   :  { %2973 = vst [vmem:[#allocation40_spill] sm:$0xff] %v2300_v63 }
  0xa8   :  { %v118_v60 = vpop.f32.mrf.mxu0 }
  0xa9   :  { %v2298_v43 = vadd.f32 %v118_v60, %v76_v58 }
  0xaa   :  { %v178_v54 = vpop.f32.mrf.mxu3 }
  0xab   :  { %2972 = vst [vmem:[#allocation39_spill] sm:$0xff] %v2298_v43  ;;  %v2304_v50 = vadd.f32 %v178_v54, %v79_v52 }
  0xad   :  { %2974 = vst [vmem:[#allocation41_spill] sm:$0xff] %v2304_v50 }
  0xb0   :  { %v262_v2 = vpop.f32.mrf.mxu0 }
  0xb1   :  { %v325_v14 = vadd.f32 %v262_v2, %v2298_v43  ;;  %v282_v62 = vpop.f32.mrf.mxu1 }
  0xb2   :  { %v326_v0 = vadd.f32 %v282_v62, %v2300_v63 }
  0xb3   :  { %v1586_v3 = vmul.f32 -1.442695, %v325_v14 }
  0xb4   :  { %v1587_v51 = vmul.f32 -1.442695, %v326_v0 }
  0xb5   :  { %1619 = vpow2.f32 %v1586_v3 }
  0xb6   :  { %1621 = vpow2.f32 %v1587_v51 }
  0xb7   :  { %v322_v48 = vpop.f32.mrf.mxu3 }
  0xb8   :  { %v158_v1 = vpop.f32.mrf.mxu2  ;;  %v328_v58 = vadd.f32 %v322_v48, %v2304_v50 }
  0xb9   :  { %v2307_v62 = vadd.f32 %v158_v1, %v78_v46 }
  0xba   :  { %v1588_v55 = vmul.f32 -1.442695, %v328_v58 }
  0xbb   :  { %v1620_v60 = vpop.eup %1619  ;;  %2975 = vst [vmem:[#allocation42_spill] sm:$0xff] %v2307_v62 }
  0xbc   :  { %v1622_v56 = vpop.eup %1621  ;;  %v332_v47 = vadd.f32 1.0, %v1620_v60  ;;  %1623 = vpow2.f32 %v1588_v55 }
  0xbd   :  { %v351_v45 = vadd.f32 1.0, %v1622_v56 }
  0xbe   :  { %1625 = vrcp.f32 %v332_v47  ;;  %v344_v60 = vand.u32 2147483648, %v332_v47  ;;  %v342_v56 = vand.u32 2147483647, %v332_v47  ;;  %vm338_vm4 = vweird.f32 %v332_v47 }
  0xbf   :  { %1627 = vrcp.f32 %v351_v45  ;;  %v363_v59 = vand.u32 2147483648, %v351_v45  ;;  %v361_v1 = vand.u32 2147483647, %v351_v45  ;;  %vm357_vm5 = vweird.f32 %v351_v45 }
  0xc0   :  { %v302_v0 = vpop.f32.mrf.mxu2  ;;  %vm343_vm7 = vcmp.eq.f32.partialorder %v342_v56, 8.507059e+37  ;;  %v2981_v56 = vld [vmem:[#allocation17_spill] sm:$0xff] }
  0xc1   :  { %v327_v51 = vadd.f32 %v302_v0, %v2307_v62  ;;  %v345_v0 = vor.u32 1.1754944e-38, %v344_v60  ;;  %v364_v43 = vor.u32 1.1754944e-38, %v363_v59  ;;  %vm362_vm9 = vcmp.eq.f32.partialorder %v361_v1, 8.507059e+37  ;;  %v2983_v1 = vld [vmem:[#allocation34_spill] sm:$0xff] }
  0xc2   :  { %v1624_v52 = vpop.eup %1623 }
  0xc3   :  { %v371_v3 = vadd.f32 1.0, %v1624_v52 }
  0xc4   :  { %v1626_v54 = vpop.eup %1625 }
  0xc5   :  { %v1628_v14 = vpop.eup %1627  ;;  %v334_v2 = vmul.f32 %v1626_v54, %v332_v47  ;;  %1629 = vrcp.f32 %v371_v3  ;;  %vm339_vm2 = vweird.f32 %v1626_v54  ;;  %v383_v60 = vand.u32 2147483648, %v371_v3 }
  0xc6   :  { %v353_v48 = vmul.f32 %v1628_v14, %v351_v45  ;;  %1631 = vtanh.f32 %v327_v51  ;;  %vm358_vm3 = vweird.f32 %v1628_v14  ;;  %vm340_vm6 = vmor %vm338_vm4, %vm339_vm2  ;;  %vm377_vm11 = vweird.f32 %v371_v3 }
  0xc7   :  { %v335_v58 = vsub.f32 1.0, %v334_v2  ;;  %vm359_vm8 = vmor %vm357_vm5, %vm358_vm3  ;;  %v384_v59 = vor.u32 1.1754944e-38, %v383_v60  ;;  %v2993_v60 = vld [vmem:[#allocation27_spill] sm:$0xff] }
  0xc8   :  { %v354_v50 = vsub.f32 1.0, %v353_v48 }
  0xc9   :  { %v336_v55 = vmul.f32 %v1626_v54, %v335_v58 }
  0xca   :  { %v355_v46 = vmul.f32 %v1628_v14, %v354_v50 }
  0xcb   :  { %v337_v63 = vadd.f32 %v1626_v54, %v336_v55  ;;  %v1630_v52 = vpop.eup %1629 }
  0xcc   :  { %v356_v62 = vadd.f32 %v1628_v14, %v355_v46  ;;  %v373_v61 = vmul.f32 %v1630_v52, %v371_v3  ;;  %v1632_v51 = vpop.eup %1631  ;;  %vm378_vm10 = vweird.f32 %v1630_v52  ;;  %v2982_v46 = vld [vmem:[#allocation18_spill] sm:$0xff] }
  0xcd   :  { %v341_v2 = vsel %vm340_vm6, %v1626_v54, %v337_v63  ;;  %v381_v63 = vand.u32 2147483647, %v371_v3  ;;  %vm379_vm12 = vmor %vm377_vm11, %vm378_vm10  ;;  %v2980_v3 = vld [vmem:[#allocation16_spill] sm:$0xff] }
  0xce   :  { %v346_v48 = vsel %vm343_vm7, %v345_v0, %v341_v2  ;;  %v360_v58 = vsel %vm359_vm8, %v1628_v14, %v356_v62  ;;  %v374_v44 = vsub.f32 1.0, %v373_v61  ;;  %v2985_v0 = vld [vmem:[#allocation20_spill] sm:$0xff]  ;;  %v2986_v2 = vld [vmem:[#allocation21_spill] sm:$0xff] }
  0xcf   :  { %v365_v50 = vsel %vm362_vm9, %v364_v43, %v360_v58  ;;  %v388_v42 = vmul.f32 %v1632_v51, %v346_v48  ;;  %vm382_vm13 = vcmp.eq.f32.partialorder %v381_v63, 8.507059e+37  ;;  %v2979_v43 = vld [vmem:[#allocation30_spill] sm:$0xff]  ;;  %v2987_v51 = vld [vmem:[#allocation35_spill] sm:$0xff]  ;;  %v2994_v63 = vld [vmem:[#allocation28_spill] sm:$0xff] }
  0xd0   :  { %v387_v41 = vmul.f32 0.0, %v365_v50  ;;  %v375_v55 = vmul.f32 %v1630_v52, %v374_v44  ;;  %v2978_v44 = vld [vmem:[#allocation15_spill] sm:$0xff]  ;;  %v2988_v48 = vld [vmem:[#allocation22_spill] sm:$0xff]  ;;  %v2990_v50 = vld [vmem:[#allocation24_spill] sm:$0xff] }
  0xd1   :  { %v2989_v58 = vld [vmem:[#allocation23_spill] sm:$0xff] }
  0xd2   :  { %v2310_v47 = vadd.f32 %v388_v42, %v387_v41  ;;  %v376_v45 = vadd.f32 %v1630_v52, %v375_v55  ;;  %v2976_v41 = vld [vmem:[#allocation13_spill] sm:$0xff]  ;;  %v2977_v42 = vld [vmem:[#allocation14_spill] sm:$0xff]  ;;  %v2991_v55 = vld [vmem:[#allocation36_spill] sm:$0xff] }
  0xd4   :  { %1633 = vtanh.f32 %v2310_v47  ;;  %v380_v54 = vsel %vm379_vm12, %v1630_v52, %v376_v45  ;;  %v2984_v52 = vld [vmem:[#allocation19_spill] sm:$0xff]  ;;  %v2992_v45 = vld [vmem:[#allocation25_spill] sm:$0xff] }
  0xd5   :  { %v385_v14 = vsel %vm382_vm13, %v384_v59, %v380_v54  ;;  %v2995_v54 = vld [vmem:[#allocation37_spill] sm:$0xff] }
  0xd6   :  { %v2996_v59 = vld [vmem:[#allocation29_spill] sm:$0xff] }
  0xda   :  { %v1634_v62 = vpop.eup %1633 }
  0xdb   :  { %v391_v61 = vmul.f32 %v1634_v62, %v385_v14  ;;  %v2997_v62 = vld [vmem:[#allocation31_spill] sm:$0xff]  ;;  %v2998_v14 = vld [vmem:[#allocation32_spill] sm:$0xff] }
  0xdd   :  { %408 = vmatmul.f32.vlgmr.msra.gmra.mxu0 %v391_v61  ;;  %428 = vmatmul.f32.vlgmr.msra.gmra.mxu1 %v391_v61 }
  0xde   :  { %448 = vmatmul.f32.vlgmr.msra.gmra.mxu2 %v391_v61  ;;  %468 = vmatmul.f32.vlgmr.msra.gmra.mxu3 %v391_v61  ;;  %v2999_v61 = vld [vmem:[#allocation38_spill] sm:$0xff] }
  0xdf   :  { %722 = vmatpush.msra.mxu0 %v1969_v4  ;;  %742 = vmatpush.msra.mxu1 %v1971_v5 }
  0xe0   :  { %762 = vmatpush.msra.mxu2 %v2002_v17  ;;  %782 = vmatpush.msra.mxu3 %v1973_v6 }
  0xe1   :  { %723 = vmatpush.msra.mxu0 %v1977_v7  ;;  %743 = vmatpush.msra.mxu1 %v1979_v8 }
  0xe2   :  { %763 = vmatpush.msra.mxu2 %v2008_v19  ;;  %783 = vmatpush.msra.mxu3 %v1981_v9 }
  0xe3   :  { %724 = vmatpush.msra.mxu0 %v1985_v10  ;;  %744 = vmatpush.msra.mxu1 %v1988_v11 }
  0xe4   :  { %764 = vmatpush.msra.mxu2 %v2020_v23  ;;  %784 = vmatpush.msra.mxu3 %v1990_v12 }
  0xe5   :  { %725 = vmatpush.msra.mxu0 %v1994_v13  ;;  %745 = vmatpush.msra.mxu1 %v1997_v15 }
  0xe6   :  { %765 = vmatpush.msra.mxu2 %v2032_v27  ;;  %785 = vmatpush.msra.mxu3 %v1999_v16 }
  0xe7   :  { %726 = vmatpush.msra.mxu0 %v2006_v18  ;;  %746 = vmatpush.msra.mxu1 %v2011_v20 }
  0xe8   :  { %766 = vmatpush.msra.mxu2 %v2044_v31  ;;  %786 = vmatpush.msra.mxu3 %v2013_v21 }
  0xe9   :  { %727 = vmatpush.msra.mxu0 %v2018_v22  ;;  %747 = vmatpush.msra.mxu1 %v2023_v24 }
  0xea   :  { %767 = vmatpush.msra.mxu2 %v2056_v35  ;;  %787 = vmatpush.msra.mxu3 %v2025_v25 }
  0xeb   :  { %728 = vmatpush.msra.mxu0 %v2030_v26  ;;  %748 = vmatpush.msra.mxu1 %v2035_v28 }
  0xec   :  { %768 = vmatpush.msra.mxu2 %v2068_v39  ;;  %788 = vmatpush.msra.mxu3 %v2037_v29 }
  0xed   :  { %729 = vmatpush.msra.mxu0 %v2042_v30  ;;  %749 = vmatpush.msra.mxu1 %v2047_v32 }
  0xee   :  { %769 = vmatpush.msra.mxu2 %v2098_v49  ;;  %789 = vmatpush.msra.mxu3 %v2049_v33 }
  0xef   :  { %730 = vmatpush.msra.mxu0 %v2054_v34  ;;  %750 = vmatpush.msra.mxu1 %v2059_v36 }
  0xf0   :  { %770 = vmatpush.msra.mxu2 %v2110_v53  ;;  %790 = vmatpush.msra.mxu3 %v2061_v37 }
  0xf1   :  { %731 = vmatpush.msra.mxu0 %v2066_v38  ;;  %751 = vmatpush.msra.mxu1 %v2071_v40 }
  0xf2   :  { %771 = vmatpush.msra.mxu2 %v2122_v57  ;;  %791 = vmatpush.msra.mxu3 %v2976_v41 }
  0xf3   :  { %732 = vmatpush.msra.mxu0 %v2977_v42  ;;  %752 = vmatpush.msra.mxu1 %v2978_v44 }
  0xf4   :  { %772 = vmatpush.msra.mxu2 %v2979_v43  ;;  %792 = vmatpush.msra.mxu3 %v2980_v3 }
  0xf5   :  { %733 = vmatpush.msra.mxu0 %v2981_v56  ;;  %753 = vmatpush.msra.mxu1 %v2982_v46 }
  0xf6   :  { %773 = vmatpush.msra.mxu2 %v2983_v1  ;;  %793 = vmatpush.msra.mxu3 %v2984_v52  ;;  %v3003_v52 = vld [vmem:[#allocation41_spill] sm:$0xff] }
  0xf7   :  { %734 = vmatpush.msra.mxu0 %v2985_v0  ;;  %754 = vmatpush.msra.mxu1 %v2986_v2  ;;  %v3002_v2 = vld [vmem:[#allocation40_spill] sm:$0xff] }
  0xf8   :  { %774 = vmatpush.msra.mxu2 %v2987_v51  ;;  %794 = vmatpush.msra.mxu3 %v2988_v48  ;;  %v3001_v51 = vld [vmem:[#allocation39_spill] sm:$0xff] }
  0xf9   :  { %735 = vmatpush.msra.mxu0 %v2989_v58  ;;  %755 = vmatpush.msra.mxu1 %v2990_v50  ;;  %v3000_v58 = vld [vmem:[#allocation33_spill] sm:$0xff] }
  0xfa   :  { %775 = vmatpush.msra.mxu2 %v2991_v55  ;;  %795 = vmatpush.msra.mxu3 %v2992_v45 }
  0xfb   :  { %736 = vmatpush.msra.mxu0 %v2993_v60  ;;  %756 = vmatpush.msra.mxu1 %v2994_v63 }
  0xfc   :  { %776 = vmatpush.msra.mxu2 %v2995_v54  ;;  %796 = vmatpush.msra.mxu3 %v2996_v59 }
  0xfd   :  { %737 = vmatpush.msra.mxu0 %v2997_v62  ;;  %757 = vmatpush.msra.mxu1 %v2998_v14 }
  0xfe   :  { %777 = vmatpush.msra.mxu2 %v2999_v61  ;;  %797 = vmatpush.msra.mxu3 %v3000_v58 }
 0x15a   :  { %v409_v50 = vpop.f32.mrf.mxu0  ;;  %v429_v55 = vpop.f32.mrf.mxu1 }
 0x15b   :  { %v476_v48 = vrot.slane %v409_v50, 7  ;;  %v477_v45 = vrot.slane %v429_v55, 7 }
 0x15d   :  { %v484_v60 = vadd.f32 %v476_v48, %v3001_v51  ;;  %v485_v63 = vadd.f32 %v477_v45, %v3002_v2 }
 0x15f   :  { %v1589_v0 = vmul.f32 -1.442695, %v484_v60  ;;  %v1590_v54 = vmul.f32 -1.442695, %v485_v63  ;;  %v3004_v63 = vld [vmem:[#allocation42_spill] sm:$0xff] }
 0x161   :  { %1635 = vpow2.f32 %v1589_v0  ;;  %v469_v59 = vpop.f32.mrf.mxu3  ;;  %v449_v50 = vpop.f32.mrf.mxu2 }
 0x162   :  { %1637 = vpow2.f32 %v1590_v54  ;;  %v479_v62 = vrot.slane %v469_v59, 7  ;;  %v478_v48 = vrot.slane %v449_v50, 7 }
 0x164   :  { %v487_v14 = vadd.f32 %v479_v62, %v3003_v52  ;;  %v486_v0 = vadd.f32 %v478_v48, %v3004_v63 }
 0x166   :  { %v1591_v1 = vmul.f32 -1.442695, %v487_v14 }
 0x167   :  { %v1636_v61 = vpop.eup %1635 }
 0x168   :  { %v1638_v46 = vpop.eup %1637  ;;  %v491_v58 = vadd.f32 1.0, %v1636_v61  ;;  %1639 = vpow2.f32 %v1591_v1 }
 0x169   :  { %v510_v56 = vadd.f32 1.0, %v1638_v46 }
 0x16a   :  { %1641 = vrcp.f32 %v491_v58  ;;  %v503_v52 = vand.u32 2147483648, %v491_v58  ;;  %v501_v46 = vand.u32 2147483647, %v491_v58  ;;  %vm497_vm0 = vweird.f32 %v491_v58 }
 0x16b   :  { %1643 = vrcp.f32 %v510_v56  ;;  %v522_v61 = vand.u32 2147483648, %v510_v56  ;;  %v520_v50 = vand.u32 2147483647, %v510_v56  ;;  %vm516_vm1 = vweird.f32 %v510_v56 }
 0x16c   :  { %v504_v48 = vor.u32 1.1754944e-38, %v503_v52  ;;  %vm502_vm4 = vcmp.eq.f32.partialorder %v501_v46, 8.507059e+37 }
 0x16d   :  { %vm521_vm5 = vcmp.eq.f32.partialorder %v520_v50, 8.507059e+37 }
 0x16e   :  { %v1640_v55 = vpop.eup %1639 }
 0x16f   :  { %v530_v45 = vadd.f32 1.0, %v1640_v55 }
 0x170   :  { %v1642_v60 = vpop.eup %1641 }
 0x171   :  { %v1644_v2 = vpop.eup %1643  ;;  %v493_v54 = vmul.f32 %v1642_v60, %v491_v58  ;;  %1645 = vrcp.f32 %v530_v45  ;;  %vm498_vm14 = vweird.f32 %v1642_v60  ;;  %vm536_vm7 = vweird.f32 %v530_v45 }
 0x172   :  { %v512_v59 = vmul.f32 %v1644_v2, %v510_v56  ;;  %1647 = vtanh.f32 %v486_v0  ;;  %vm517_vm15 = vweird.f32 %v1644_v2  ;;  %vm499_vm2 = vmor %vm497_vm0, %vm498_vm14 }
 0x173   :  { %v494_v62 = vsub.f32 1.0, %v493_v54  ;;  %v547_v54 = vrot.slane %v2310_v47, 7  ;;  %vm518_vm3 = vmor %vm516_vm1, %vm517_vm15  ;;  %v542_v47 = vand.u32 2147483648, %v530_v45 }
 0x174   :  { %v513_v14 = vsub.f32 1.0, %v512_v59  ;;  %v523_v59 = vor.u32 1.1754944e-38, %v522_v61 }
 0x175   :  { %v495_v1 = vmul.f32 %v1642_v60, %v494_v62  ;;  %v543_v61 = vor.u32 1.1754944e-38, %v542_v47 }
 0x176   :  { %v514_v51 = vmul.f32 %v1644_v2, %v513_v14 }
 0x177   :  { %v1646_v3 = vpop.eup %1645  ;;  %v496_v55 = vadd.f32 %v1642_v60, %v495_v1 }
 0x178   :  { %v515_v63 = vadd.f32 %v1644_v2, %v514_v51  ;;  %v532_v43 = vmul.f32 %v1646_v3, %v530_v45  ;;  %v1648_v62 = vpop.eup %1647  ;;  %vm537_vm6 = vweird.f32 %v1646_v3  ;;  %v540_v51 = vand.u32 2147483647, %v530_v45 }
 0x179   :  { %v500_v0 = vsel %vm499_vm2, %v1642_v60, %v496_v55  ;;  %vm538_vm8 = vmor %vm536_vm7, %vm537_vm6 }
 0x17a   :  { %v505_v44 = vsel %vm502_vm4, %v504_v48, %v500_v0  ;;  %v519_v42 = vsel %vm518_vm3, %v1644_v2, %v515_v63  ;;  %v533_v14 = vsub.f32 1.0, %v532_v43  ;;  %vm541_vm9 = vcmp.eq.f32.partialorder %v540_v51, 8.507059e+37 }
 0x17b   :  { %v524_v41 = vsel %vm521_vm5, %v523_v59, %v519_v42  ;;  %v550_v57 = vmul.f32 %v1648_v62, %v505_v44  ;;  %v3034_v62 = vld [vmem:[#allocation42_spill] sm:$0xff] }
 0x17c   :  { %v549_v1 = vmul.f32 %v547_v54, %v524_v41  ;;  %v534_v58 = vmul.f32 %v1646_v3, %v533_v14 }
 0x17e   :  { %v2382_v56 = vadd.f32 %v550_v57, %v549_v1  ;;  %v535_v52 = vadd.f32 %v1646_v3, %v534_v58  ;;  %v3033_v57 = vld [vmem:[#allocation41_spill] sm:$0xff] }
 0x180   :  { %1649 = vtanh.f32 %v2382_v56  ;;  %v539_v60 = vsel %vm538_vm8, %v1646_v3, %v535_v52 }
 0x181   :  { %v544_v63 = vsel %vm541_vm9, %v543_v61, %v539_v60 }
 0x186   :  { %v1650_v2 = vpop.eup %1649 }
 0x187   :  { %v553_v43 = vmul.f32 %v1650_v2, %v544_v63 }
 0x189   :  { %v555_v42 = vrot.slane %v553_v43, 1 }
 0x18b   :  { %573 = vmatmul.f32.vlgmr.msrb.gmra.mxu0 %v555_v42  ;;  %593 = vmatmul.f32.vlgmr.msrb.gmra.mxu1 %v555_v42 }
 0x18c   :  { %613 = vmatmul.f32.vlgmr.msrb.gmra.mxu2 %v555_v42  ;;  %633 = vmatmul.f32.vlgmr.msrb.gmra.mxu3 %v555_v42 }
 0x18d   :  { %887 = vmatpush.msrb.mxu0 %v1969_v4  ;;  %907 = vmatpush.msrb.mxu1 %v1971_v5  ;;  %v3005_v4 = vld [vmem:[#allocation26_spill] sm:$0xff]  ;;  %v3006_v5 = vld [vmem:[#allocation13_spill] sm:$0xff] }
 0x18e   :  { %927 = vmatpush.msrb.mxu2 %v2002_v17  ;;  %947 = vmatpush.msrb.mxu3 %v1973_v6  ;;  %v3007_v6 = vld [vmem:[#allocation14_spill] sm:$0xff]  ;;  %v3017_v17 = vld [vmem:[#allocation35_spill] sm:$0xff] }
 0x18f   :  { %888 = vmatpush.msrb.mxu0 %v1977_v7  ;;  %908 = vmatpush.msrb.mxu1 %v1979_v8  ;;  %v3008_v7 = vld [vmem:[#allocation15_spill] sm:$0xff]  ;;  %v3009_v8 = vld [vmem:[#allocation30_spill] sm:$0xff] }
 0x190   :  { %928 = vmatpush.msrb.mxu2 %v2008_v19  ;;  %948 = vmatpush.msrb.mxu3 %v1981_v9  ;;  %v3010_v9 = vld [vmem:[#allocation16_spill] sm:$0xff]  ;;  %v3019_v19 = vld [vmem:[#allocation23_spill] sm:$0xff] }
 0x191   :  { %889 = vmatpush.msrb.mxu0 %v1985_v10  ;;  %909 = vmatpush.msrb.mxu1 %v1988_v11  ;;  %v3011_v10 = vld [vmem:[#allocation17_spill] sm:$0xff]  ;;  %v3012_v11 = vld [vmem:[#allocation18_spill] sm:$0xff] }
 0x192   :  { %929 = vmatpush.msrb.mxu2 %v2020_v23  ;;  %949 = vmatpush.msrb.mxu3 %v1990_v12  ;;  %v3013_v12 = vld [vmem:[#allocation34_spill] sm:$0xff]  ;;  %v3023_v23 = vld [vmem:[#allocation27_spill] sm:$0xff] }
 0x193   :  { %890 = vmatpush.msrb.mxu0 %v1994_v13  ;;  %910 = vmatpush.msrb.mxu1 %v1997_v15  ;;  %v3014_v13 = vld [vmem:[#allocation19_spill] sm:$0xff]  ;;  %v3015_v15 = vld [vmem:[#allocation20_spill] sm:$0xff] }
 0x194   :  { %930 = vmatpush.msrb.mxu2 %v2032_v27  ;;  %950 = vmatpush.msrb.mxu3 %v1999_v16  ;;  %v3016_v16 = vld [vmem:[#allocation21_spill] sm:$0xff]  ;;  %v3027_v27 = vld [vmem:[#allocation31_spill] sm:$0xff] }
 0x195   :  { %891 = vmatpush.msrb.mxu0 %v2006_v18  ;;  %911 = vmatpush.msrb.mxu1 %v2011_v20  ;;  %v3018_v18 = vld [vmem:[#allocation22_spill] sm:$0xff]  ;;  %v3020_v20 = vld [vmem:[#allocation24_spill] sm:$0xff] }
 0x196   :  { %931 = vmatpush.msrb.mxu2 %v2044_v31  ;;  %951 = vmatpush.msrb.mxu3 %v2013_v21  ;;  %v3021_v21 = vld [vmem:[#allocation36_spill] sm:$0xff] }
 0x197   :  { %892 = vmatpush.msrb.mxu0 %v2018_v22  ;;  %912 = vmatpush.msrb.mxu1 %v2023_v24  ;;  %v3022_v22 = vld [vmem:[#allocation25_spill] sm:$0xff]  ;;  %v3024_v24 = vld [vmem:[#allocation28_spill] sm:$0xff] }
 0x198   :  { %932 = vmatpush.msrb.mxu2 %v2056_v35  ;;  %952 = vmatpush.msrb.mxu3 %v2025_v25  ;;  %v3025_v25 = vld [vmem:[#allocation37_spill] sm:$0xff]  ;;  %v3031_v35 = vld [vmem:[#allocation39_spill] sm:$0xff] }
 0x199   :  { %893 = vmatpush.msrb.mxu0 %v2030_v26  ;;  %913 = vmatpush.msrb.mxu1 %v2035_v28  ;;  %v3026_v26 = vld [vmem:[#allocation29_spill] sm:$0xff]  ;;  %v3028_v28 = vld [vmem:[#allocation32_spill] sm:$0xff] }
 0x19a   :  { %933 = vmatpush.msrb.mxu2 %v2068_v39  ;;  %953 = vmatpush.msrb.mxu3 %v2037_v29  ;;  %v3029_v29 = vld [vmem:[#allocation38_spill] sm:$0xff] }
 0x19b   :  { %894 = vmatpush.msrb.mxu0 %v2042_v30  ;;  %914 = vmatpush.msrb.mxu1 %v2047_v32  ;;  %v3030_v30 = vld [vmem:[#allocation33_spill] sm:$0xff] }
 0x19c   :  { %934 = vmatpush.msrb.mxu2 %v2098_v49  ;;  %954 = vmatpush.msrb.mxu3 %v2049_v33 }
 0x19d   :  { %895 = vmatpush.msrb.mxu0 %v2054_v34  ;;  %915 = vmatpush.msrb.mxu1 %v2059_v36 }
 0x19e   :  { %935 = vmatpush.msrb.mxu2 %v2110_v53  ;;  %955 = vmatpush.msrb.mxu3 %v2061_v37  ;;  %v3032_v37 = vld [vmem:[#allocation40_spill] sm:$0xff] }
 0x19f   :  { %896 = vmatpush.msrb.mxu0 %v2066_v38  ;;  %916 = vmatpush.msrb.mxu1 %v2071_v40 }
 0x1a0   :  { %936 = vmatpush.msrb.mxu2 %v3005_v4  ;;  %956 = vmatpush.msrb.mxu3 %v3006_v5 }
 0x1a1   :  { %897 = vmatpush.msrb.mxu0 %v3007_v6  ;;  %917 = vmatpush.msrb.mxu1 %v3008_v7 }
 0x1a2   :  { %937 = vmatpush.msrb.mxu2 %v3009_v8  ;;  %957 = vmatpush.msrb.mxu3 %v3010_v9  ;;  %v712_v9 = vrot.slane %v2382_v56, 7 }
 0x1a3   :  { %898 = vmatpush.msrb.mxu0 %v3011_v10  ;;  %918 = vmatpush.msrb.mxu1 %v3012_v11 }
 0x1a4   :  { %938 = vmatpush.msrb.mxu2 %v3013_v12  ;;  %958 = vmatpush.msrb.mxu3 %v3014_v13 }
 0x1a5   :  { %899 = vmatpush.msrb.mxu0 %v3015_v15  ;;  %919 = vmatpush.msrb.mxu1 %v3016_v16 }
 0x1a6   :  { %939 = vmatpush.msrb.mxu2 %v3017_v17  ;;  %959 = vmatpush.msrb.mxu3 %v3018_v18 }
 0x1a7   :  { %900 = vmatpush.msrb.mxu0 %v3019_v19  ;;  %920 = vmatpush.msrb.mxu1 %v3020_v20 }
 0x1a8   :  { %940 = vmatpush.msrb.mxu2 %v3021_v21  ;;  %960 = vmatpush.msrb.mxu3 %v3022_v22 }
 0x1a9   :  { %901 = vmatpush.msrb.mxu0 %v3023_v23  ;;  %921 = vmatpush.msrb.mxu1 %v3024_v24 }
 0x1aa   :  { %941 = vmatpush.msrb.mxu2 %v3025_v25  ;;  %961 = vmatpush.msrb.mxu3 %v3026_v26 }
 0x1ab   :  { %902 = vmatpush.msrb.mxu0 %v3027_v27  ;;  %922 = vmatpush.msrb.mxu1 %v3028_v28 }
 0x1ac   :  { %942 = vmatpush.msrb.mxu2 %v3029_v29  ;;  %962 = vmatpush.msrb.mxu3 %v3030_v30  ;;  %v2457_v30 = vld [vmem:[#allocation8 + $0x1e0] sm:$0xff] }
 0x208   :  { %v574_v31 = vpop.f32.mrf.mxu0  ;;  %v594_v32 = vpop.f32.mrf.mxu1 }
 0x209   :  { %v641_v33 = vrot.slane %v574_v31, 6  ;;  %v642_v34 = vrot.slane %v594_v32, 6  ;;  %v2460_v31 = vld [vmem:[#allocation8 + $0x1e8] sm:$0xff]  ;;  %v2463_v32 = vld [vmem:[#allocation8 + $0x1f0] sm:$0xff] }
 0x20b   :  { %v649_v36 = vadd.f32 %v641_v33, %v3031_v35  ;;  %v650_v38 = vadd.f32 %v642_v34, %v3032_v37  ;;  %v2466_v33 = vld [vmem:[#allocation8 + $0x1f8] sm:$0xff]  ;;  %v2469_v34 = vld [vmem:[#allocation8 + $0x1c0] sm:$0xff] }
 0x20d   :  { %v1592_v39 = vmul.f32 -1.442695, %v649_v36  ;;  %v1593_v40 = vmul.f32 -1.442695, %v650_v38  ;;  %v2472_v36 = vld [vmem:[#allocation8 + $0x1c8] sm:$0xff]  ;;  %v2475_v38 = vld [vmem:[#allocation8 + $0x1d0] sm:$0xff] }
 0x20f   :  { %1651 = vpow2.f32 %v1592_v39  ;;  %v634_v49 = vpop.f32.mrf.mxu3  ;;  %v614_v55 = vpop.f32.mrf.mxu2  ;;  %v2478_v39 = vld [vmem:[#allocation8 + $0x1d8] sm:$0xff] }
 0x210   :  { %1653 = vpow2.f32 %v1593_v40  ;;  %v644_v53 = vrot.slane %v634_v49, 6  ;;  %v643_v48 = vrot.slane %v614_v55, 6  ;;  %v2481_v40 = vld [vmem:[#allocation8 + $0x1a0] sm:$0xff]  ;;  %v2484_v49 = vld [vmem:[#allocation8 + $0x1a8] sm:$0xff] }
 0x211   :  { %v2508_v55 = vld [vmem:[#allocation8 + $0x168] sm:$0xff] }
 0x212   :  { %v652_v41 = vadd.f32 %v644_v53, %v3033_v57  ;;  %v651_v14 = vadd.f32 %v643_v48, %v3034_v62  ;;  %v2487_v53 = vld [vmem:[#allocation8 + $0x1b0] sm:$0xff] }
 0x213   :  { %v2511_v48 = vld [vmem:[#allocation8 + $0x170] sm:$0xff] }
 0x214   :  { %v1594_v44 = vmul.f32 -1.442695, %v652_v41  ;;  %v2490_v41 = vld [vmem:[#allocation8 + $0x1b8] sm:$0xff] }
 0x215   :  { %v1652_v3 = vpop.eup %1651 }
 0x216   :  { %v1654_v45 = vpop.eup %1653  ;;  %v656_v46 = vadd.f32 1.0, %v1652_v3  ;;  %1655 = vpow2.f32 %v1594_v44  ;;  %v2493_v44 = vld [vmem:[#allocation8 + $0x180] sm:$0xff]  ;;  %v2496_v3 = vld [vmem:[#allocation8 + $0x188] sm:$0xff] }
 0x217   :  { %v675_v50 = vadd.f32 1.0, %v1654_v45  ;;  %v2499_v45 = vld [vmem:[#allocation8 + $0x190] sm:$0xff] }
 0x218   :  { %1657 = vrcp.f32 %v656_v46  ;;  %v668_v60 = vand.u32 2147483648, %v656_v46  ;;  %v666_v63 = vand.u32 2147483647, %v656_v46  ;;  %vm662_vm12 = vweird.f32 %v656_v46 }
 0x219   :  { %1659 = vrcp.f32 %v675_v50  ;;  %v687_v61 = vand.u32 2147483648, %v675_v50  ;;  %v685_v42 = vand.u32 2147483647, %v675_v50  ;;  %vm681_vm13 = vweird.f32 %v675_v50 }
 0x21a   :  { %v669_v6 = vor.u32 1.1754944e-38, %v668_v60  ;;  %vm667_vm0 = vcmp.eq.f32.partialorder %v666_v63, 8.507059e+37  ;;  %v2541_v60 = vld [vmem:[#allocation8 + $0x100] sm:$0xff]  ;;  %v2550_v63 = vld [vmem:[#allocation8 + $0x118] sm:$0xff] }
 0x21b   :  { %v688_v10 = vor.u32 1.1754944e-38, %v687_v61  ;;  %vm686_vm1 = vcmp.eq.f32.partialorder %v685_v42, 8.507059e+37  ;;  %v2544_v61 = vld [vmem:[#allocation8 + $0x108] sm:$0xff] }
 0x21c   :  { %v1656_v54 = vpop.eup %1655  ;;  %v2556_v42 = vld [vmem:[#allocation8 + $0xe8] sm:$0xff] }
 0x21d   :  { %v695_v59 = vadd.f32 1.0, %v1656_v54  ;;  %v2514_v54 = vld [vmem:[#allocation8 + $0x178] sm:$0xff] }
 0x21e   :  { %v1658_v0 = vpop.eup %1657 }
 0x21f   :  { %v1660_v1 = vpop.eup %1659  ;;  %v658_v58 = vmul.f32 %v1658_v0, %v656_v46  ;;  %1661 = vrcp.f32 %v695_v59  ;;  %vm663_vm10 = vweird.f32 %v1658_v0  ;;  %v707_v56 = vand.u32 2147483648, %v695_v59  ;;  %v2502_v46 = vld [vmem:[#allocation8 + $0x198] sm:$0xff] }
 0x220   :  { %v677_v52 = vmul.f32 %v1660_v1, %v675_v50  ;;  %1663 = vtanh.f32 %v651_v14  ;;  %vm682_vm11 = vweird.f32 %v1660_v1  ;;  %vm664_vm14 = vmor %vm662_vm12, %vm663_vm10  ;;  %vm701_vm3 = vweird.f32 %v695_v59  ;;  %v2505_v50 = vld [vmem:[#allocation8 + $0x160] sm:$0xff]  ;;  %v2523_v14 = vld [vmem:[#allocation8 + $0x150] sm:$0xff] }
 0x221   :  { %v659_v47 = vsub.f32 1.0, %v658_v58  ;;  %vm683_vm15 = vmor %vm681_vm13, %vm682_vm11  ;;  %v705_v23 = vand.u32 2147483647, %v695_v59  ;;  %v708_v25 = vor.u32 1.1754944e-38, %v707_v56  ;;  %v2529_v58 = vld [vmem:[#allocation8 + $0x120] sm:$0xff]  ;;  %v2610_v56 = vld [vmem:[#allocation8 + $0x78] sm:$0xff] }
 0x222   :  { %v678_v51 = vsub.f32 1.0, %v677_v52  ;;  %v2532_v52 = vld [vmem:[#allocation8 + $0x128] sm:$0xff]  ;;  %3048 = vst [vmem:[#allocation22_spill] sm:$0xff] %v2610_v56 }
 0x223   :  { %v660_v2 = vmul.f32 %v1658_v0, %v659_v47  ;;  %vm706_vm5 = vcmp.eq.f32.partialorder %v705_v23, 8.507059e+37  ;;  %v2535_v47 = vld [vmem:[#allocation8 + $0x130] sm:$0xff]  ;;  %v2613_v23 = vld [vmem:[#allocation8 + $0x40] sm:$0xff] }
 0x224   :  { %v679_v43 = vmul.f32 %v1660_v1, %v678_v51  ;;  %v2538_v51 = vld [vmem:[#allocation8 + $0x138] sm:$0xff]  ;;  %3049 = vst [vmem:[#allocation23_spill] sm:$0xff] %v2613_v23 }
 0x225   :  { %v1662_v4 = vpop.eup %1661  ;;  %v661_v5 = vadd.f32 %v1658_v0, %v660_v2  ;;  %v2547_v2 = vld [vmem:[#allocation8 + $0x110] sm:$0xff] }
 0x226   :  { %v680_v7 = vadd.f32 %v1660_v1, %v679_v43  ;;  %v697_v8 = vmul.f32 %v1662_v4, %v695_v59  ;;  %v1664_v12 = vpop.eup %1663  ;;  %vm702_vm2 = vweird.f32 %v1662_v4  ;;  %v2517_v59 = vld [vmem:[#allocation8 + $0x140] sm:$0xff] }
 0x227   :  { %v665_v11 = vsel %vm664_vm14, %v1658_v0, %v661_v5  ;;  %vm703_vm4 = vmor %vm701_vm3, %vm702_vm2  ;;  %v2520_v0 = vld [vmem:[#allocation8 + $0x148] sm:$0xff]  ;;  %v2553_v43 = vld [vmem:[#allocation8 + $0xe0] sm:$0xff] }
 0x228   :  { %v670_v13 = vsel %vm667_vm0, %v669_v6, %v665_v11  ;;  %v684_v15 = vsel %vm683_vm15, %v1660_v1, %v680_v7  ;;  %v698_v16 = vsub.f32 1.0, %v697_v8  ;;  %v2526_v1 = vld [vmem:[#allocation8 + $0x158] sm:$0xff]  ;;  %v2565_v6 = vld [vmem:[#allocation8 + $0xc0] sm:$0xff]  ;;  %v2568_v7 = vld [vmem:[#allocation8 + $0xc8] sm:$0xff] }
 0x229   :  { %v689_v17 = vsel %vm686_vm1, %v688_v10, %v684_v15  ;;  %v715_v18 = vmul.f32 %v1664_v12, %v670_v13  ;;  %v2562_v5 = vld [vmem:[#allocation8 + $0xf8] sm:$0xff]  ;;  %v2571_v8 = vld [vmem:[#allocation8 + $0xd0] sm:$0xff]  ;;  %v2577_v10 = vld [vmem:[#allocation8 + $0xa0] sm:$0xff] }
 0x22a   :  { %v714_v19 = vmul.f32 %v712_v9, %v689_v17  ;;  %v699_v20 = vmul.f32 %v1662_v4, %v698_v16  ;;  %3035 = vst [vmem:[#allocation26_spill] sm:$0xff] %v2571_v8  ;;  %v2574_v9 = vld [vmem:[#allocation8 + $0xd8] sm:$0xff]  ;;  %v2580_v11 = vld [vmem:[#allocation8 + $0xa8] sm:$0xff]  ;;  %v2583_v12 = vld [vmem:[#allocation8 + $0xb0] sm:$0xff] }
 0x22b   :  { %3036 = vst [vmem:[#allocation13_spill] sm:$0xff] %v2574_v9  ;;  %v2586_v13 = vld [vmem:[#allocation8 + $0xb8] sm:$0xff]  ;;  %v2589_v15 = vld [vmem:[#allocation8 + $0x80] sm:$0xff]  ;;  %v2592_v16 = vld [vmem:[#allocation8 + $0x88] sm:$0xff] }
 0x22c   :  { %v2454_v21 = vadd.f32 %v715_v18, %v714_v19  ;;  %v700_v22 = vadd.f32 %v1662_v4, %v699_v20  ;;  %3037 = vst [vmem:[#allocation14_spill] sm:$0xff] %v2577_v10  ;;  %v2595_v17 = vld [vmem:[#allocation8 + $0x90] sm:$0xff]  ;;  %v2598_v18 = vld [vmem:[#allocation8 + $0x98] sm:$0xff]  ;;  %v2601_v19 = vld [vmem:[#allocation8 + $0x60] sm:$0xff] }
 0x22d   :  { %3038 = vst [vmem:[#allocation15_spill] sm:$0xff] %v2580_v11  ;;  %v2604_v20 = vld [vmem:[#allocation8 + $0x68] sm:$0xff] }
 0x22e   :  { %1665 = vtanh.f32 %v2454_v21  ;;  %v704_v24 = vsel %vm703_vm4, %v1662_v4, %v700_v22  ;;  %v2559_v4 = vld [vmem:[#allocation8 + $0xf0] sm:$0xff]  ;;  %3039 = vst [vmem:[#allocation30_spill] sm:$0xff] %v2583_v12 }
 0x22f   :  { %v709_v27 = vsel %vm706_vm5, %v708_v25, %v704_v24  ;;  %3040 = vst [vmem:[#allocation16_spill] sm:$0xff] %v2586_v13  ;;  %v2607_v22 = vld [vmem:[#allocation8 + $0x70] sm:$0xff]  ;;  %v2616_v24 = vld [vmem:[#allocation8 + $0x48] sm:$0xff] }
 0x230   :  { %3041 = vst [vmem:[#allocation17_spill] sm:$0xff] %v2589_v15  ;;  %v2619_v25 = vld [vmem:[#allocation8 + $0x50] sm:$0xff] }
 0x231   :  { %3042 = vst [vmem:[#allocation18_spill] sm:$0xff] %v2592_v16 }
 0x232   :  { %3043 = vst [vmem:[#allocation34_spill] sm:$0xff] %v2595_v17 }
 0x233   :  { %3044 = vst [vmem:[#allocation19_spill] sm:$0xff] %v2598_v18 }
 0x234   :  { %v1666_v26 = vpop.eup %1665  ;;  %3045 = vst [vmem:[#allocation20_spill] sm:$0xff] %v2601_v19 }
 0x235   :  { %v718_v28 = vmul.f32 %v1666_v26, %v709_v27  ;;  %3046 = vst [vmem:[#allocation21_spill] sm:$0xff] %v2604_v20  ;;  %v2622_v26 = vld [vmem:[#allocation8 + $0x58] sm:$0xff]  ;;  %v2625_v27 = vld [vmem:[#allocation8 + $0x20] sm:$0xff] }
 0x236   :  { %3047 = vst [vmem:[#allocation35_spill] sm:$0xff] %v2607_v22 }
 0x237   :  { %v720_v29 = vrot.slane %v718_v28, 2  ;;  %3050 = vst [vmem:[#allocation24_spill] sm:$0xff] %v2616_v24  ;;  %v2628_v28 = vld [vmem:[#allocation8 + $0x28] sm:$0xff] }
 0x238   :  { %3051 = vst [vmem:[#allocation36_spill] sm:$0xff] %v2619_v25 }
 0x239   :  { %738 = vmatmul.f32.vlgmr.msra.gmra.mxu0 %v720_v29  ;;  %758 = vmatmul.f32.vlgmr.msra.gmra.mxu1 %v720_v29  ;;  %3052 = vst [vmem:[#allocation25_spill] sm:$0xff] %v2622_v26 }
 0x23a   :  { %778 = vmatmul.f32.vlgmr.msra.gmra.mxu2 %v720_v29  ;;  %798 = vmatmul.f32.vlgmr.msra.gmra.mxu3 %v720_v29  ;;  %3053 = vst [vmem:[#allocation27_spill] sm:$0xff] %v2625_v27  ;;  %v2631_v29 = vld [vmem:[#allocation8 + $0x30] sm:$0xff] }
 0x23b   :  { %1052 = vmatpush.msra.mxu0 %v2457_v30  ;;  %1072 = vmatpush.msra.mxu1 %v2460_v31  ;;  %3054 = vst [vmem:[#allocation28_spill] sm:$0xff] %v2628_v28 }
 0x23c   :  { %1092 = vmatpush.msra.mxu2 %v2463_v32  ;;  %1112 = vmatpush.msra.mxu3 %v2466_v33  ;;  %3055 = vst [vmem:[#allocation37_spill] sm:$0xff] %v2631_v29 }
 0x23d   :  { %1053 = vmatpush.msra.mxu0 %v2469_v34  ;;  %1073 = vmatpush.msra.mxu1 %v2472_v36 }
 0x23e   :  { %1093 = vmatpush.msra.mxu2 %v2475_v38  ;;  %1113 = vmatpush.msra.mxu3 %v2478_v39 }
 0x23f   :  { %1054 = vmatpush.msra.mxu0 %v2481_v40  ;;  %1074 = vmatpush.msra.mxu1 %v2484_v49 }
 0x240   :  { %1094 = vmatpush.msra.mxu2 %v2487_v53  ;;  %1114 = vmatpush.msra.mxu3 %v2490_v41 }
 0x241   :  { %1055 = vmatpush.msra.mxu0 %v2493_v44  ;;  %1075 = vmatpush.msra.mxu1 %v2496_v3 }
 0x242   :  { %1095 = vmatpush.msra.mxu2 %v2499_v45  ;;  %1115 = vmatpush.msra.mxu3 %v2502_v46 }
 0x243   :  { %1056 = vmatpush.msra.mxu0 %v2505_v50  ;;  %1076 = vmatpush.msra.mxu1 %v2508_v55 }
 0x244   :  { %1096 = vmatpush.msra.mxu2 %v2511_v48  ;;  %1116 = vmatpush.msra.mxu3 %v2514_v54 }
 0x245   :  { %1057 = vmatpush.msra.mxu0 %v2517_v59  ;;  %1077 = vmatpush.msra.mxu1 %v2520_v0 }
 0x246   :  { %1097 = vmatpush.msra.mxu2 %v2523_v14  ;;  %1117 = vmatpush.msra.mxu3 %v2526_v1 }
 0x247   :  { %1058 = vmatpush.msra.mxu0 %v2529_v58  ;;  %1078 = vmatpush.msra.mxu1 %v2532_v52 }
 0x248   :  { %1098 = vmatpush.msra.mxu2 %v2535_v47  ;;  %1118 = vmatpush.msra.mxu3 %v2538_v51 }
 0x249   :  { %1059 = vmatpush.msra.mxu0 %v2541_v60  ;;  %1079 = vmatpush.msra.mxu1 %v2544_v61 }
 0x24a   :  { %1099 = vmatpush.msra.mxu2 %v2547_v2  ;;  %1119 = vmatpush.msra.mxu3 %v2550_v63 }
 0x24b   :  { %1060 = vmatpush.msra.mxu0 %v2553_v43  ;;  %1080 = vmatpush.msra.mxu1 %v2556_v42 }
 0x24c   :  { %1100 = vmatpush.msra.mxu2 %v2559_v4  ;;  %1120 = vmatpush.msra.mxu3 %v2562_v5 }
 0x24d   :  { %1061 = vmatpush.msra.mxu0 %v2565_v6  ;;  %1081 = vmatpush.msra.mxu1 %v2568_v7 }
 0x24e   :  { %1101 = vmatpush.msra.mxu2 %v2571_v8  ;;  %1121 = vmatpush.msra.mxu3 %v2574_v9 }
 0x24f   :  { %1062 = vmatpush.msra.mxu0 %v2577_v10  ;;  %1082 = vmatpush.msra.mxu1 %v2580_v11 }
 0x250   :  { %1102 = vmatpush.msra.mxu2 %v2583_v12  ;;  %1122 = vmatpush.msra.mxu3 %v2586_v13 }
 0x251   :  { %1063 = vmatpush.msra.mxu0 %v2589_v15  ;;  %1083 = vmatpush.msra.mxu1 %v2592_v16 }
 0x252   :  { %1103 = vmatpush.msra.mxu2 %v2595_v17  ;;  %1123 = vmatpush.msra.mxu3 %v2598_v18 }
 0x253   :  { %1064 = vmatpush.msra.mxu0 %v2601_v19  ;;  %1084 = vmatpush.msra.mxu1 %v2604_v20 }
 0x254   :  { %1104 = vmatpush.msra.mxu2 %v2607_v22  ;;  %1124 = vmatpush.msra.mxu3 %v2610_v56 }
 0x255   :  { %1065 = vmatpush.msra.mxu0 %v2613_v23  ;;  %1085 = vmatpush.msra.mxu1 %v2616_v24  ;;  %v2634_v24 = vld [vmem:[#allocation8 + $0x38] sm:$0xff] }
 0x256   :  { %1105 = vmatpush.msra.mxu2 %v2619_v25  ;;  %1125 = vmatpush.msra.mxu3 %v2622_v26  ;;  %3056 = vst [vmem:[#allocation29_spill] sm:$0xff] %v2634_v24  ;;  %v2637_v25 = vld [vmem:[#allocation8] sm:$0xff]  ;;  %v2640_v26 = vld [vmem:[#allocation8 + $0x8] sm:$0xff] }
 0x257   :  { %1066 = vmatpush.msra.mxu0 %v2625_v27  ;;  %1086 = vmatpush.msra.mxu1 %v2628_v28  ;;  %3057 = vst [vmem:[#allocation31_spill] sm:$0xff] %v2637_v25  ;;  %v2643_v27 = vld [vmem:[#allocation8 + $0x10] sm:$0xff]  ;;  %v2646_v28 = vld [vmem:[#allocation8 + $0x18] sm:$0xff] }
 0x258   :  { %1106 = vmatpush.msra.mxu2 %v2631_v29  ;;  %1126 = vmatpush.msra.mxu3 %v2634_v24  ;;  %3058 = vst [vmem:[#allocation32_spill] sm:$0xff] %v2640_v26 }
 0x259   :  { %1067 = vmatpush.msra.mxu0 %v2637_v25  ;;  %1087 = vmatpush.msra.mxu1 %v2640_v26  ;;  %3059 = vst [vmem:[#allocation38_spill] sm:$0xff] %v2643_v27 }
 0x25a   :  { %1107 = vmatpush.msra.mxu2 %v2643_v27  ;;  %3060 = vst [vmem:[#allocation33_spill] sm:$0xff] %v2646_v28  ;;  %1127 = vmatpush.msra.mxu3 %v2646_v28 }
 0x2b6   :  { %v739_v29 = vpop.f32.mrf.mxu0  ;;  %v759_v23 = vpop.f32.mrf.mxu1 }
 0x2b7   :  { %v806_v56 = vrot.slane %v739_v29, 5  ;;  %v807_v24 = vrot.slane %v759_v23, 5 }
 0x2b9   :  { %v814_v22 = vadd.f32 %v806_v56, %v3031_v35  ;;  %v815_v25 = vadd.f32 %v807_v24, %v3032_v37 }
 0x2bb   :  { %v1595_v20 = vmul.f32 -1.442695, %v814_v22  ;;  %v1596_v19 = vmul.f32 -1.442695, %v815_v25 }
 0x2bd   :  { %1667 = vpow2.f32 %v1595_v20  ;;  %v799_v26 = vpop.f32.mrf.mxu3  ;;  %v779_v29 = vpop.f32.mrf.mxu2 }
 0x2be   :  { %1669 = vpow2.f32 %v1596_v19  ;;  %v809_v18 = vrot.slane %v799_v26, 5  ;;  %v808_v56 = vrot.slane %v779_v29, 5 }
 0x2c0   :  { %v817_v27 = vadd.f32 %v809_v18, %v3033_v57  ;;  %v816_v20 = vadd.f32 %v808_v56, %v3034_v62 }
 0x2c2   :  { %v1597_v17 = vmul.f32 -1.442695, %v817_v27 }
 0x2c3   :  { %v1668_v16 = vpop.eup %1667 }
 0x2c4   :  { %v1670_v15 = vpop.eup %1669  ;;  %v821_v28 = vadd.f32 1.0, %v1668_v16  ;;  %1671 = vpow2.f32 %v1597_v17 }
 0x2c5   :  { %v840_v13 = vadd.f32 1.0, %v1670_v15 }
 0x2c6   :  { %1673 = vrcp.f32 %v821_v28  ;;  %v833_v57 = vand.u32 2147483648, %v821_v28  ;;  %v831_v15 = vand.u32 2147483647, %v821_v28  ;;  %vm827_vm8 = vweird.f32 %v821_v28 }
 0x2c7   :  { %1675 = vrcp.f32 %v840_v13  ;;  %v852_v16 = vand.u32 2147483648, %v840_v13  ;;  %v850_v29 = vand.u32 2147483647, %v840_v13  ;;  %vm846_vm9 = vweird.f32 %v840_v13 }
 0x2c8   :  { %v834_v56 = vor.u32 1.1754944e-38, %v833_v57  ;;  %vm832_vm12 = vcmp.eq.f32.partialorder %v831_v15, 8.507059e+37  ;;  %v3066_v15 = vld [vmem:[#allocation16_spill] sm:$0xff] }
 0x2c9   :  { %vm851_vm13 = vcmp.eq.f32.partialorder %v850_v29, 8.507059e+37  ;;  %v3067_v29 = vld [vmem:[#allocation17_spill] sm:$0xff] }
 0x2ca   :  { %v1672_v23 = vpop.eup %1671 }
 0x2cb   :  { %v860_v24 = vadd.f32 1.0, %v1672_v23 }
 0x2cc   :  { %v1674_v22 = vpop.eup %1673 }
 0x2cd   :  { %v1676_v25 = vpop.eup %1675  ;;  %v823_v19 = vmul.f32 %v1674_v22, %v821_v28  ;;  %1677 = vrcp.f32 %v860_v24  ;;  %vm828_vm6 = vweird.f32 %v1674_v22  ;;  %vm866_vm15 = vweird.f32 %v860_v24 }
 0x2ce   :  { %v842_v26 = vmul.f32 %v1676_v25, %v840_v13  ;;  %1679 = vtanh.f32 %v816_v20  ;;  %vm847_vm7 = vweird.f32 %v1676_v25  ;;  %vm829_vm10 = vmor %vm827_vm8, %vm828_vm6 }
 0x2cf   :  { %v824_v18 = vsub.f32 1.0, %v823_v19  ;;  %v877_v19 = vrot.slane %v2454_v21, 7  ;;  %vm848_vm11 = vmor %vm846_vm9, %vm847_vm7  ;;  %v870_v21 = vand.u32 2147483647, %v860_v24 }
 0x2d0   :  { %v843_v27 = vsub.f32 1.0, %v842_v26  ;;  %v853_v26 = vor.u32 1.1754944e-38, %v852_v16 }
 0x2d1   :  { %v825_v17 = vmul.f32 %v1674_v22, %v824_v18  ;;  %vm871_vm1 = vcmp.eq.f32.partialorder %v870_v21, 8.507059e+37  ;;  %v3079_v21 = vld [vmem:[#allocation27_spill] sm:$0xff] }
 0x2d2   :  { %v844_v37 = vmul.f32 %v1676_v25, %v843_v27 }
 0x2d3   :  { %v1678_v35 = vpop.eup %1677  ;;  %v826_v23 = vadd.f32 %v1674_v22, %v825_v17 }
 0x2d4   :  { %v845_v62 = vadd.f32 %v1676_v25, %v844_v37  ;;  %v862_v12 = vmul.f32 %v1678_v35, %v860_v24  ;;  %v1680_v18 = vpop.eup %1679  ;;  %vm867_vm14 = vweird.f32 %v1678_v35  ;;  %v872_v37 = vand.u32 2147483648, %v860_v24  ;;  %v3065_v24 = vld [vmem:[#allocation30_spill] sm:$0xff] }
 0x2d5   :  { %v830_v20 = vsel %vm829_vm10, %v1674_v22, %v826_v23  ;;  %vm868_vm0 = vmor %vm866_vm15, %vm867_vm14  ;;  %v3068_v23 = vld [vmem:[#allocation18_spill] sm:$0xff] }
 0x2d6   :  { %v835_v11 = vsel %vm832_vm12, %v834_v56, %v830_v20  ;;  %v849_v10 = vsel %vm848_vm11, %v1676_v25, %v845_v62  ;;  %v863_v27 = vsub.f32 1.0, %v862_v12  ;;  %v873_v16 = vor.u32 1.1754944e-38, %v872_v37  ;;  %v3069_v56 = vld [vmem:[#allocation34_spill] sm:$0xff]  ;;  %v3072_v20 = vld [vmem:[#allocation21_spill] sm:$0xff] }
 0x2d7   :  { %v854_v9 = vsel %vm851_vm13, %v853_v26, %v849_v10  ;;  %v880_v8 = vmul.f32 %v1680_v18, %v835_v11  ;;  %v3064_v11 = vld [vmem:[#allocation15_spill] sm:$0xff]  ;;  %v3071_v26 = vld [vmem:[#allocation20_spill] sm:$0xff]  ;;  %v3078_v37 = vld [vmem:[#allocation25_spill] sm:$0xff] }
 0x2d8   :  { %v879_v17 = vmul.f32 %v877_v19, %v854_v9  ;;  %v864_v28 = vmul.f32 %v1678_v35, %v863_v27  ;;  %v3063_v9 = vld [vmem:[#allocation14_spill] sm:$0xff]  ;;  %v3070_v19 = vld [vmem:[#allocation19_spill] sm:$0xff] }
 0x2d9   :  { %v3073_v18 = vld [vmem:[#allocation35_spill] sm:$0xff]  ;;  %v3074_v27 = vld [vmem:[#allocation22_spill] sm:$0xff] }
 0x2da   :  { %v2654_v13 = vadd.f32 %v880_v8, %v879_v17  ;;  %v865_v57 = vadd.f32 %v1678_v35, %v864_v28  ;;  %v3062_v8 = vld [vmem:[#allocation13_spill] sm:$0xff]  ;;  %v3075_v17 = vld [vmem:[#allocation23_spill] sm:$0xff]  ;;  %v3076_v28 = vld [vmem:[#allocation24_spill] sm:$0xff] }
 0x2dc   :  { %1681 = vtanh.f32 %v2654_v13  ;;  %v869_v22 = vsel %vm868_vm0, %v1678_v35, %v865_v57  ;;  %v3061_v35 = vld [vmem:[#allocation26_spill] sm:$0xff]  ;;  %v3077_v57 = vld [vmem:[#allocation36_spill] sm:$0xff] }
 0x2dd   :  { %v874_v25 = vsel %vm871_vm1, %v873_v16, %v869_v22  ;;  %v3080_v22 = vld [vmem:[#allocation28_spill] sm:$0xff]  ;;  %v3081_v16 = vld [vmem:[#allocation37_spill] sm:$0xff] }
 0x2e2   :  { %v1682_v62 = vpop.eup %1681 }
 0x2e3   :  { %v883_v12 = vmul.f32 %v1682_v62, %v874_v25  ;;  %v3082_v62 = vld [vmem:[#allocation29_spill] sm:$0xff]  ;;  %v3083_v25 = vld [vmem:[#allocation31_spill] sm:$0xff] }
 0x2e5   :  { %v885_v10 = vrot.slane %v883_v12, 3  ;;  %v3084_v12 = vld [vmem:[#allocation32_spill] sm:$0xff] }
 0x2e7   :  { %903 = vmatmul.f32.vlgmr.msrb.gmra.mxu0 %v885_v10  ;;  %923 = vmatmul.f32.vlgmr.msrb.gmra.mxu1 %v885_v10 }
 0x2e8   :  { %943 = vmatmul.f32.vlgmr.msrb.gmra.mxu2 %v885_v10  ;;  %963 = vmatmul.f32.vlgmr.msrb.gmra.mxu3 %v885_v10  ;;  %v3085_v10 = vld [vmem:[#allocation38_spill] sm:$0xff] }
 0x2e9   :  { %1217 = vmatpush.msrb.mxu0 %v2457_v30  ;;  %1237 = vmatpush.msrb.mxu1 %v2460_v31 }
 0x2ea   :  { %1257 = vmatpush.msrb.mxu2 %v2463_v32  ;;  %1277 = vmatpush.msrb.mxu3 %v2466_v33 }
 0x2eb   :  { %1218 = vmatpush.msrb.mxu0 %v2469_v34  ;;  %1238 = vmatpush.msrb.mxu1 %v2472_v36 }
 0x2ec   :  { %1258 = vmatpush.msrb.mxu2 %v2475_v38  ;;  %1278 = vmatpush.msrb.mxu3 %v2478_v39 }
 0x2ed   :  { %1219 = vmatpush.msrb.mxu0 %v2481_v40  ;;  %1239 = vmatpush.msrb.mxu1 %v2484_v49 }
 0x2ee   :  { %1259 = vmatpush.msrb.mxu2 %v2487_v53  ;;  %1279 = vmatpush.msrb.mxu3 %v2490_v41 }
 0x2ef   :  { %1220 = vmatpush.msrb.mxu0 %v2493_v44  ;;  %1240 = vmatpush.msrb.mxu1 %v2496_v3 }
 0x2f0   :  { %1260 = vmatpush.msrb.mxu2 %v2499_v45  ;;  %1280 = vmatpush.msrb.mxu3 %v2502_v46 }
 0x2f1   :  { %1221 = vmatpush.msrb.mxu0 %v2505_v50  ;;  %1241 = vmatpush.msrb.mxu1 %v2508_v55 }
 0x2f2   :  { %1261 = vmatpush.msrb.mxu2 %v2511_v48  ;;  %1281 = vmatpush.msrb.mxu3 %v2514_v54 }
 0x2f3   :  { %1222 = vmatpush.msrb.mxu0 %v2517_v59  ;;  %1242 = vmatpush.msrb.mxu1 %v2520_v0 }
 0x2f4   :  { %1262 = vmatpush.msrb.mxu2 %v2523_v14  ;;  %1282 = vmatpush.msrb.mxu3 %v2526_v1 }
 0x2f5   :  { %1223 = vmatpush.msrb.mxu0 %v2529_v58  ;;  %1243 = vmatpush.msrb.mxu1 %v2532_v52 }
 0x2f6   :  { %1263 = vmatpush.msrb.mxu2 %v2535_v47  ;;  %1283 = vmatpush.msrb.mxu3 %v2538_v51 }
 0x2f7   :  { %1224 = vmatpush.msrb.mxu0 %v2541_v60  ;;  %1244 = vmatpush.msrb.mxu1 %v2544_v61 }
 0x2f8   :  { %1264 = vmatpush.msrb.mxu2 %v2547_v2  ;;  %1284 = vmatpush.msrb.mxu3 %v2550_v63 }
 0x2f9   :  { %1225 = vmatpush.msrb.mxu0 %v2553_v43  ;;  %1245 = vmatpush.msrb.mxu1 %v2556_v42 }
 0x2fa   :  { %1265 = vmatpush.msrb.mxu2 %v2559_v4  ;;  %1285 = vmatpush.msrb.mxu3 %v2562_v5 }
 0x2fb   :  { %1226 = vmatpush.msrb.mxu0 %v2565_v6  ;;  %1246 = vmatpush.msrb.mxu1 %v2568_v7 }
 0x2fc   :  { %1266 = vmatpush.msrb.mxu2 %v3061_v35  ;;  %1286 = vmatpush.msrb.mxu3 %v3062_v8 }
 0x2fd   :  { %1227 = vmatpush.msrb.mxu0 %v3063_v9  ;;  %1247 = vmatpush.msrb.mxu1 %v3064_v11 }
 0x2fe   :  { %1267 = vmatpush.msrb.mxu2 %v3065_v24  ;;  %1287 = vmatpush.msrb.mxu3 %v3066_v15 }
 0x2ff   :  { %1228 = vmatpush.msrb.mxu0 %v3067_v29  ;;  %1248 = vmatpush.msrb.mxu1 %v3068_v23 }
 0x300   :  { %1268 = vmatpush.msrb.mxu2 %v3069_v56  ;;  %1288 = vmatpush.msrb.mxu3 %v3070_v19  ;;  %v3089_v19 = vld [vmem:[#allocation41_spill] sm:$0xff] }
 0x301   :  { %1229 = vmatpush.msrb.mxu0 %v3071_v26  ;;  %1249 = vmatpush.msrb.mxu1 %v3072_v20  ;;  %v3088_v20 = vld [vmem:[#allocation40_spill] sm:$0xff] }
 0x302   :  { %1269 = vmatpush.msrb.mxu2 %v3073_v18  ;;  %1289 = vmatpush.msrb.mxu3 %v3074_v27  ;;  %v3087_v18 = vld [vmem:[#allocation39_spill] sm:$0xff] }
 0x303   :  { %1230 = vmatpush.msrb.mxu0 %v3075_v17  ;;  %1250 = vmatpush.msrb.mxu1 %v3076_v28  ;;  %v3086_v17 = vld [vmem:[#allocation33_spill] sm:$0xff] }
 0x304   :  { %1270 = vmatpush.msrb.mxu2 %v3077_v57  ;;  %1290 = vmatpush.msrb.mxu3 %v3078_v37 }
 0x305   :  { %1231 = vmatpush.msrb.mxu0 %v3079_v21  ;;  %1251 = vmatpush.msrb.mxu1 %v3080_v22 }
 0x306   :  { %1271 = vmatpush.msrb.mxu2 %v3081_v16  ;;  %1291 = vmatpush.msrb.mxu3 %v3082_v62 }
 0x307   :  { %1232 = vmatpush.msrb.mxu0 %v3083_v25  ;;  %1252 = vmatpush.msrb.mxu1 %v3084_v12 }
 0x308   :  { %1272 = vmatpush.msrb.mxu2 %v3085_v10  ;;  %1292 = vmatpush.msrb.mxu3 %v3086_v17 }
 0x364   :  { %v904_v28 = vpop.f32.mrf.mxu0  ;;  %v924_v57 = vpop.f32.mrf.mxu1 }
 0x365   :  { %v971_v27 = vrot.slane %v904_v28, 4  ;;  %v972_v37 = vrot.slane %v924_v57, 4 }
 0x367   :  { %v979_v21 = vadd.f32 %v971_v27, %v3087_v18  ;;  %v980_v22 = vadd.f32 %v972_v37, %v3088_v20 }
 0x369   :  { %v1598_v26 = vmul.f32 -1.442695, %v979_v21  ;;  %v1599_v16 = vmul.f32 -1.442695, %v980_v22  ;;  %v3090_v22 = vld [vmem:[#allocation42_spill] sm:$0xff] }
 0x36b   :  { %1683 = vpow2.f32 %v1598_v26  ;;  %v964_v62 = vpop.f32.mrf.mxu3  ;;  %v944_v28 = vpop.f32.mrf.mxu2 }
 0x36c   :  { %1685 = vpow2.f32 %v1599_v16  ;;  %v974_v25 = vrot.slane %v964_v62, 4  ;;  %v973_v27 = vrot.slane %v944_v28, 4 }
 0x36e   :  { %v982_v12 = vadd.f32 %v974_v25, %v3089_v19  ;;  %v981_v26 = vadd.f32 %v973_v27, %v3090_v22 }
 0x370   :  { %v1600_v56 = vmul.f32 -1.442695, %v982_v12 }
 0x371   :  { %v1684_v10 = vpop.eup %1683 }
 0x372   :  { %v1686_v23 = vpop.eup %1685  ;;  %v986_v17 = vadd.f32 1.0, %v1684_v10  ;;  %1687 = vpow2.f32 %v1600_v56 }
 0x373   :  { %v1005_v29 = vadd.f32 1.0, %v1686_v23 }
 0x374   :  { %1689 = vrcp.f32 %v986_v17  ;;  %v998_v19 = vand.u32 2147483648, %v986_v17  ;;  %v996_v23 = vand.u32 2147483647, %v986_v17  ;;  %vm992_vm4 = vweird.f32 %v986_v17 }
 0x375   :  { %1691 = vrcp.f32 %v1005_v29  ;;  %v1017_v10 = vand.u32 2147483648, %v1005_v29  ;;  %v1015_v28 = vand.u32 2147483647, %v1005_v29  ;;  %vm1011_vm5 = vweird.f32 %v1005_v29 }
 0x376   :  { %v999_v27 = vor.u32 1.1754944e-38, %v998_v19  ;;  %vm997_vm8 = vcmp.eq.f32.partialorder %v996_v23, 8.507059e+37 }
 0x377   :  { %vm1016_vm9 = vcmp.eq.f32.partialorder %v1015_v28, 8.507059e+37 }
 0x378   :  { %v1688_v57 = vpop.eup %1687 }
 0x379   :  { %v1025_v37 = vadd.f32 1.0, %v1688_v57 }
 0x37a   :  { %v1690_v21 = vpop.eup %1689 }
 0x37b   :  { %v1692_v20 = vpop.eup %1691  ;;  %v988_v16 = vmul.f32 %v1690_v21, %v986_v17  ;;  %1693 = vrcp.f32 %v1025_v37  ;;  %vm993_vm2 = vweird.f32 %v1690_v21  ;;  %vm1031_vm11 = vweird.f32 %v1025_v37 }
 0x37c   :  { %v1007_v62 = vmul.f32 %v1692_v20, %v1005_v29  ;;  %1695 = vtanh.f32 %v981_v26  ;;  %vm1012_vm3 = vweird.f32 %v1692_v20  ;;  %vm994_vm6 = vmor %vm992_vm4, %vm993_vm2 }
 0x37d   :  { %v989_v25 = vsub.f32 1.0, %v988_v16  ;;  %v1042_v16 = vrot.slane %v2654_v13, 7  ;;  %vm1013_vm7 = vmor %vm1011_vm5, %vm1012_vm3  ;;  %v1037_v13 = vand.u32 2147483648, %v1025_v37 }
 0x37e   :  { %v1008_v12 = vsub.f32 1.0, %v1007_v62  ;;  %v1018_v62 = vor.u32 1.1754944e-38, %v1017_v10 }
 0x37f   :  { %v990_v56 = vmul.f32 %v1690_v21, %v989_v25  ;;  %v1038_v10 = vor.u32 1.1754944e-38, %v1037_v13 }
 0x380   :  { %v1009_v18 = vmul.f32 %v1692_v20, %v1008_v12 }
 0x381   :  { %v1694_v15 = vpop.eup %1693  ;;  %v991_v57 = vadd.f32 %v1690_v21, %v990_v56 }
 0x382   :  { %v1010_v22 = vadd.f32 %v1692_v20, %v1009_v18  ;;  %v1027_v24 = vmul.f32 %v1694_v15, %v1025_v37  ;;  %v1696_v25 = vpop.eup %1695  ;;  %vm1032_vm10 = vweird.f32 %v1694_v15  ;;  %v1035_v18 = vand.u32 2147483647, %v1025_v37 }
 0x383   :  { %v995_v26 = vsel %vm994_vm6, %v1690_v21, %v991_v57  ;;  %vm1033_vm12 = vmor %vm1031_vm11, %vm1032_vm10 }
 0x384   :  { %v1000_v11 = vsel %vm997_vm8, %v999_v27, %v995_v26  ;;  %v1014_v9 = vsel %vm1013_vm7, %v1692_v20, %v1010_v22  ;;  %v1028_v12 = vsub.f32 1.0, %v1027_v24  ;;  %vm1036_vm13 = vcmp.eq.f32.partialorder %v1035_v18, 8.507059e+37 }
 0x385   :  { %v1019_v8 = vsel %vm1016_vm9, %v1018_v62, %v1014_v9  ;;  %v1045_v35 = vmul.f32 %v1696_v25, %v1000_v11  ;;  %v3120_v25 = vld [vmem:[#allocation42_spill] sm:$0xff] }
 0x386   :  { %v1044_v56 = vmul.f32 %v1042_v16, %v1019_v8  ;;  %v1029_v17 = vmul.f32 %v1694_v15, %v1028_v12 }
 0x388   :  { %v2726_v29 = vadd.f32 %v1045_v35, %v1044_v56  ;;  %v1030_v19 = vadd.f32 %v1694_v15, %v1029_v17  ;;  %v3119_v35 = vld [vmem:[#allocation41_spill] sm:$0xff] }
 0x38a   :  { %1697 = vtanh.f32 %v2726_v29  ;;  %v1034_v21 = vsel %vm1033_vm12, %v1694_v15, %v1030_v19 }
 0x38b   :  { %v1039_v22 = vsel %vm1036_vm13, %v1038_v10, %v1034_v21 }
 0x390   :  { %v1698_v20 = vpop.eup %1697 }
 0x391   :  { %v1048_v24 = vmul.f32 %v1698_v20, %v1039_v22 }
 0x393   :  { %v1050_v9 = vrot.slane %v1048_v24, 4 }
 0x395   :  { %1068 = vmatmul.f32.vlgmr.msra.gmra.mxu0 %v1050_v9  ;;  %1088 = vmatmul.f32.vlgmr.msra.gmra.mxu1 %v1050_v9 }
 0x396   :  { %1108 = vmatmul.f32.vlgmr.msra.gmra.mxu2 %v1050_v9  ;;  %1128 = vmatmul.f32.vlgmr.msra.gmra.mxu3 %v1050_v9 }
 0x397   :  { %1382 = vmatpush.msra.mxu0 %v2457_v30  ;;  %1402 = vmatpush.msra.mxu1 %v2460_v31  ;;  %v3091_v30 = vld [vmem:[#allocation26_spill] sm:$0xff]  ;;  %v3092_v31 = vld [vmem:[#allocation13_spill] sm:$0xff] }
 0x398   :  { %1422 = vmatpush.msra.mxu2 %v2463_v32  ;;  %1442 = vmatpush.msra.mxu3 %v2466_v33  ;;  %v3093_v32 = vld [vmem:[#allocation14_spill] sm:$0xff]  ;;  %v3094_v33 = vld [vmem:[#allocation15_spill] sm:$0xff] }
 0x399   :  { %1383 = vmatpush.msra.mxu0 %v2469_v34  ;;  %1403 = vmatpush.msra.mxu1 %v2472_v36  ;;  %v3095_v34 = vld [vmem:[#allocation30_spill] sm:$0xff]  ;;  %v3096_v36 = vld [vmem:[#allocation16_spill] sm:$0xff] }
 0x39a   :  { %1423 = vmatpush.msra.mxu2 %v2475_v38  ;;  %1443 = vmatpush.msra.mxu3 %v2478_v39  ;;  %v3097_v38 = vld [vmem:[#allocation17_spill] sm:$0xff]  ;;  %v3098_v39 = vld [vmem:[#allocation18_spill] sm:$0xff] }
 0x39b   :  { %1384 = vmatpush.msra.mxu0 %v2481_v40  ;;  %1404 = vmatpush.msra.mxu1 %v2484_v49  ;;  %v3099_v40 = vld [vmem:[#allocation34_spill] sm:$0xff]  ;;  %v3100_v49 = vld [vmem:[#allocation19_spill] sm:$0xff] }
 0x39c   :  { %1424 = vmatpush.msra.mxu2 %v2487_v53  ;;  %1444 = vmatpush.msra.mxu3 %v2490_v41  ;;  %v3101_v53 = vld [vmem:[#allocation20_spill] sm:$0xff]  ;;  %v3102_v41 = vld [vmem:[#allocation21_spill] sm:$0xff] }
 0x39d   :  { %1385 = vmatpush.msra.mxu0 %v2493_v44  ;;  %1405 = vmatpush.msra.mxu1 %v2496_v3  ;;  %v3103_v44 = vld [vmem:[#allocation35_spill] sm:$0xff]  ;;  %v3104_v3 = vld [vmem:[#allocation22_spill] sm:$0xff] }
 0x39e   :  { %1425 = vmatpush.msra.mxu2 %v2499_v45  ;;  %1445 = vmatpush.msra.mxu3 %v2502_v46  ;;  %v3105_v45 = vld [vmem:[#allocation23_spill] sm:$0xff]  ;;  %v3106_v46 = vld [vmem:[#allocation24_spill] sm:$0xff] }
 0x39f   :  { %1386 = vmatpush.msra.mxu0 %v2505_v50  ;;  %1406 = vmatpush.msra.mxu1 %v2508_v55  ;;  %v3107_v50 = vld [vmem:[#allocation36_spill] sm:$0xff]  ;;  %v3108_v55 = vld [vmem:[#allocation25_spill] sm:$0xff] }
 0x3a0   :  { %1426 = vmatpush.msra.mxu2 %v2511_v48  ;;  %1446 = vmatpush.msra.mxu3 %v2514_v54  ;;  %v3109_v48 = vld [vmem:[#allocation27_spill] sm:$0xff]  ;;  %v3110_v54 = vld [vmem:[#allocation28_spill] sm:$0xff] }
 0x3a1   :  { %1387 = vmatpush.msra.mxu0 %v2517_v59  ;;  %1407 = vmatpush.msra.mxu1 %v2520_v0  ;;  %v3111_v59 = vld [vmem:[#allocation37_spill] sm:$0xff] }
 0x3a2   :  { %1427 = vmatpush.msra.mxu2 %v2523_v14  ;;  %1447 = vmatpush.msra.mxu3 %v2526_v1  ;;  %v3112_v0 = vld [vmem:[#allocation29_spill] sm:$0xff]  ;;  %v3113_v14 = vld [vmem:[#allocation31_spill] sm:$0xff]  ;;  %v3114_v1 = vld [vmem:[#allocation32_spill] sm:$0xff] }
 0x3a3   :  { %1388 = vmatpush.msra.mxu0 %v2529_v58  ;;  %1408 = vmatpush.msra.mxu1 %v2532_v52  ;;  %v3115_v58 = vld [vmem:[#allocation38_spill] sm:$0xff]  ;;  %v3116_v52 = vld [vmem:[#allocation33_spill] sm:$0xff] }
 0x3a4   :  { %1428 = vmatpush.msra.mxu2 %v2535_v47  ;;  %1448 = vmatpush.msra.mxu3 %v2538_v51 }
 0x3a5   :  { %1389 = vmatpush.msra.mxu0 %v2541_v60  ;;  %1409 = vmatpush.msra.mxu1 %v2544_v61 }
 0x3a6   :  { %1429 = vmatpush.msra.mxu2 %v2547_v2  ;;  %1449 = vmatpush.msra.mxu3 %v2550_v63  ;;  %v3117_v2 = vld [vmem:[#allocation39_spill] sm:$0xff] }
 0x3a7   :  { %1390 = vmatpush.msra.mxu0 %v2553_v43  ;;  %1410 = vmatpush.msra.mxu1 %v2556_v42  ;;  %v3118_v43 = vld [vmem:[#allocation40_spill] sm:$0xff] }
 0x3a8   :  { %1430 = vmatpush.msra.mxu2 %v2559_v4  ;;  %1450 = vmatpush.msra.mxu3 %v2562_v5 }
 0x3a9   :  { %1391 = vmatpush.msra.mxu0 %v2565_v6  ;;  %1411 = vmatpush.msra.mxu1 %v2568_v7 }
 0x3aa   :  { %1431 = vmatpush.msra.mxu2 %v3091_v30  ;;  %1451 = vmatpush.msra.mxu3 %v3092_v31 }
 0x3ab   :  { %1392 = vmatpush.msra.mxu0 %v3093_v32  ;;  %1412 = vmatpush.msra.mxu1 %v3094_v33 }
 0x3ac   :  { %1432 = vmatpush.msra.mxu2 %v3095_v34  ;;  %1452 = vmatpush.msra.mxu3 %v3096_v36  ;;  %v1207_v36 = vrot.slane %v2726_v29, 7 }
 0x3ad   :  { %1393 = vmatpush.msra.mxu0 %v3097_v38  ;;  %1413 = vmatpush.msra.mxu1 %v3098_v39 }
 0x3ae   :  { %1433 = vmatpush.msra.mxu2 %v3099_v40  ;;  %1453 = vmatpush.msra.mxu3 %v3100_v49 }
 0x3af   :  { %1394 = vmatpush.msra.mxu0 %v3101_v53  ;;  %1414 = vmatpush.msra.mxu1 %v3102_v41 }
 0x3b0   :  { %1434 = vmatpush.msra.mxu2 %v3103_v44  ;;  %1454 = vmatpush.msra.mxu3 %v3104_v3 }
 0x3b1   :  { %1395 = vmatpush.msra.mxu0 %v3105_v45  ;;  %1415 = vmatpush.msra.mxu1 %v3106_v46 }
 0x3b2   :  { %1435 = vmatpush.msra.mxu2 %v3107_v50  ;;  %1455 = vmatpush.msra.mxu3 %v3108_v55 }
 0x3b3   :  { %1396 = vmatpush.msra.mxu0 %v3109_v48  ;;  %1416 = vmatpush.msra.mxu1 %v3110_v54 }
 0x3b4   :  { %1436 = vmatpush.msra.mxu2 %v3111_v59  ;;  %1456 = vmatpush.msra.mxu3 %v3112_v0 }
 0x3b5   :  { %1397 = vmatpush.msra.mxu0 %v3113_v14  ;;  %1417 = vmatpush.msra.mxu1 %v3114_v1 }
 0x3b6   :  { %1437 = vmatpush.msra.mxu2 %v3115_v58  ;;  %1457 = vmatpush.msra.mxu3 %v3116_v52 }
 0x412   :  { %v1069_v47 = vpop.f32.mrf.mxu0  ;;  %v1089_v51 = vpop.f32.mrf.mxu1 }
 0x413   :  { %v1136_v60 = vrot.slane %v1069_v47, 3  ;;  %v1137_v61 = vrot.slane %v1089_v51, 3 }
 0x415   :  { %v1144_v63 = vadd.f32 %v1136_v60, %v3117_v2  ;;  %v1145_v42 = vadd.f32 %v1137_v61, %v3118_v43 }
 0x417   :  { %v1601_v4 = vmul.f32 -1.442695, %v1144_v63  ;;  %v1602_v5 = vmul.f32 -1.442695, %v1145_v42 }
 0x419   :  { %1699 = vpow2.f32 %v1601_v4  ;;  %v1129_v6 = vpop.f32.mrf.mxu3  ;;  %v1109_v57 = vpop.f32.mrf.mxu2 }
 0x41a   :  { %1701 = vpow2.f32 %v1602_v5  ;;  %v1139_v7 = vrot.slane %v1129_v6, 3  ;;  %v1138_v27 = vrot.slane %v1109_v57, 3 }
 0x41c   :  { %v1147_v8 = vadd.f32 %v1139_v7, %v3119_v35  ;;  %v1146_v12 = vadd.f32 %v1138_v27, %v3120_v25 }
 0x41e   :  { %v1603_v11 = vmul.f32 -1.442695, %v1147_v8 }
 0x41f   :  { %v1700_v15 = vpop.eup %1699 }
 0x420   :  { %v1702_v37 = vpop.eup %1701  ;;  %v1151_v23 = vadd.f32 1.0, %v1700_v15  ;;  %1703 = vpow2.f32 %v1603_v11 }
 0x421   :  { %v1170_v28 = vadd.f32 1.0, %v1702_v37 }
 0x422   :  { %1705 = vrcp.f32 %v1151_v23  ;;  %v1163_v21 = vand.u32 2147483648, %v1151_v23  ;;  %v1161_v22 = vand.u32 2147483647, %v1151_v23  ;;  %vm1157_vm0 = vweird.f32 %v1151_v23 }
 0x423   :  { %1707 = vrcp.f32 %v1170_v28  ;;  %v1182_v10 = vand.u32 2147483648, %v1170_v28  ;;  %v1180_v9 = vand.u32 2147483647, %v1170_v28  ;;  %vm1176_vm1 = vweird.f32 %v1170_v28 }
 0x424   :  { %v1164_v32 = vor.u32 1.1754944e-38, %v1163_v21  ;;  %vm1162_vm4 = vcmp.eq.f32.partialorder %v1161_v22, 8.507059e+37 }
 0x425   :  { %v1183_v38 = vor.u32 1.1754944e-38, %v1182_v10  ;;  %vm1181_vm5 = vcmp.eq.f32.partialorder %v1180_v9, 8.507059e+37 }
 0x426   :  { %v1704_v16 = vpop.eup %1703 }
 0x427   :  { %v1190_v62 = vadd.f32 1.0, %v1704_v16 }
 0x428   :  { %v1706_v26 = vpop.eup %1705 }
 0x429   :  { %v1708_v56 = vpop.eup %1707  ;;  %v1153_v17 = vmul.f32 %v1706_v26, %v1151_v23  ;;  %1709 = vrcp.f32 %v1190_v62  ;;  %vm1158_vm14 = vweird.f32 %v1706_v26  ;;  %v1202_v29 = vand.u32 2147483648, %v1190_v62 }
 0x42a   :  { %v1172_v19 = vmul.f32 %v1708_v56, %v1170_v28  ;;  %1711 = vtanh.f32 %v1146_v12  ;;  %vm1177_vm15 = vweird.f32 %v1708_v56  ;;  %vm1159_vm2 = vmor %vm1157_vm0, %vm1158_vm14  ;;  %vm1196_vm7 = vweird.f32 %v1190_v62 }
 0x42b   :  { %v1154_v13 = vsub.f32 1.0, %v1153_v17  ;;  %vm1178_vm3 = vmor %vm1176_vm1, %vm1177_vm15  ;;  %v1200_v48 = vand.u32 2147483647, %v1190_v62  ;;  %v1203_v59 = vor.u32 1.1754944e-38, %v1202_v29 }
 0x42c   :  { %v1173_v18 = vsub.f32 1.0, %v1172_v19 }
 0x42d   :  { %v1155_v20 = vmul.f32 %v1706_v26, %v1154_v13  ;;  %vm1201_vm9 = vcmp.eq.f32.partialorder %v1200_v48, 8.507059e+37 }
 0x42e   :  { %v1174_v24 = vmul.f32 %v1708_v56, %v1173_v18 }
 0x42f   :  { %v1710_v30 = vpop.eup %1709  ;;  %v1156_v31 = vadd.f32 %v1706_v26, %v1155_v20 }
 0x430   :  { %v1175_v33 = vadd.f32 %v1708_v56, %v1174_v24  ;;  %v1192_v34 = vmul.f32 %v1710_v30, %v1190_v62  ;;  %v1712_v40 = vpop.eup %1711  ;;  %vm1197_vm6 = vweird.f32 %v1710_v30 }
 0x431   :  { %v1160_v39 = vsel %vm1159_vm2, %v1706_v26, %v1156_v31  ;;  %vm1198_vm8 = vmor %vm1196_vm7, %vm1197_vm6 }
 0x432   :  { %v1165_v49 = vsel %vm1162_vm4, %v1164_v32, %v1160_v39  ;;  %v1179_v53 = vsel %vm1178_vm3, %v1708_v56, %v1175_v33  ;;  %v1193_v41 = vsub.f32 1.0, %v1192_v34 }
 0x433   :  { %v1184_v44 = vsel %vm1181_vm5, %v1183_v38, %v1179_v53  ;;  %v1210_v3 = vmul.f32 %v1712_v40, %v1165_v49 }
 0x434   :  { %v1209_v45 = vmul.f32 %v1207_v36, %v1184_v44  ;;  %v1194_v46 = vmul.f32 %v1710_v30, %v1193_v41 }
 0x436   :  { %v2798_v50 = vadd.f32 %v1210_v3, %v1209_v45  ;;  %v1195_v55 = vadd.f32 %v1710_v30, %v1194_v46 }
 0x438   :  { %1713 = vtanh.f32 %v2798_v50  ;;  %v1199_v54 = vsel %vm1198_vm8, %v1710_v30, %v1195_v55  ;;  %v1372_v34 = vrot.slane %v2798_v50, 7 }
 0x439   :  { %v1204_v14 = vsel %vm1201_vm9, %v1203_v59, %v1199_v54 }
 0x43e   :  { %v1714_v0 = vpop.eup %1713 }
 0x43f   :  { %v1213_v1 = vmul.f32 %v1714_v0, %v1204_v14 }
 0x441   :  { %v1215_v58 = vrot.slane %v1213_v1, 5 }
 0x443   :  { %1233 = vmatmul.f32.vlgmr.msrb.gmra.mxu0 %v1215_v58  ;;  %1253 = vmatmul.f32.vlgmr.msrb.gmra.mxu1 %v1215_v58 }
 0x444   :  { %1273 = vmatmul.f32.vlgmr.msrb.gmra.mxu2 %v1215_v58  ;;  %1293 = vmatmul.f32.vlgmr.msrb.gmra.mxu3 %v1215_v58 }
 0x4c0   :  { %v1234_v52 = vpop.f32.mrf.mxu0  ;;  %v1254_v47 = vpop.f32.mrf.mxu1 }
 0x4c1   :  { %v1301_v51 = vrot.slane %v1234_v52, 2  ;;  %v1302_v60 = vrot.slane %v1254_v47, 2 }
 0x4c3   :  { %v1309_v61 = vadd.f32 %v1301_v51, %v3117_v2  ;;  %v1310_v63 = vadd.f32 %v1302_v60, %v3118_v43 }
 0x4c5   :  { %v1604_v42 = vmul.f32 -1.442695, %v1309_v61  ;;  %v1605_v4 = vmul.f32 -1.442695, %v1310_v63 }
 0x4c7   :  { %1715 = vpow2.f32 %v1604_v42  ;;  %v1294_v5 = vpop.f32.mrf.mxu3  ;;  %v1274_v28 = vpop.f32.mrf.mxu2 }
 0x4c8   :  { %1717 = vpow2.f32 %v1605_v4  ;;  %v1304_v6 = vrot.slane %v1294_v5, 2  ;;  %v1303_v57 = vrot.slane %v1274_v28, 2 }
 0x4ca   :  { %v1312_v7 = vadd.f32 %v1304_v6, %v3119_v35  ;;  %v1311_v26 = vadd.f32 %v1303_v57, %v3120_v25 }
 0x4cc   :  { %v1606_v8 = vmul.f32 -1.442695, %v1312_v7 }
 0x4cd   :  { %v1716_v11 = vpop.eup %1715 }
 0x4ce   :  { %v1718_v15 = vpop.eup %1717  ;;  %v1316_v37 = vadd.f32 1.0, %v1716_v11  ;;  %1719 = vpow2.f32 %v1606_v8 }
 0x4cf   :  { %v1335_v23 = vadd.f32 1.0, %v1718_v15 }
 0x4d0   :  { %1721 = vrcp.f32 %v1316_v37  ;;  %v1328_v18 = vand.u32 2147483648, %v1316_v37  ;;  %v1326_v20 = vand.u32 2147483647, %v1316_v37  ;;  %vm1322_vm12 = vweird.f32 %v1316_v37 }
 0x4d1   :  { %1723 = vrcp.f32 %v1335_v23  ;;  %v1347_v21 = vand.u32 2147483648, %v1335_v23  ;;  %v1345_v24 = vand.u32 2147483647, %v1335_v23  ;;  %vm1341_vm13 = vweird.f32 %v1335_v23 }
 0x4d2   :  { %v1329_v31 = vor.u32 1.1754944e-38, %v1328_v18  ;;  %vm1327_vm0 = vcmp.eq.f32.partialorder %v1326_v20, 8.507059e+37 }
 0x4d3   :  { %v1348_v36 = vor.u32 1.1754944e-38, %v1347_v21  ;;  %vm1346_vm1 = vcmp.eq.f32.partialorder %v1345_v24, 8.507059e+37 }
 0x4d4   :  { %v1720_v27 = vpop.eup %1719 }
 0x4d5   :  { %v1355_v16 = vadd.f32 1.0, %v1720_v27 }
 0x4d6   :  { %v1722_v62 = vpop.eup %1721 }
 0x4d7   :  { %v1724_v12 = vpop.eup %1723  ;;  %v1318_v56 = vmul.f32 %v1722_v62, %v1316_v37  ;;  %1725 = vrcp.f32 %v1355_v16  ;;  %vm1323_vm10 = vweird.f32 %v1722_v62  ;;  %v1367_v50 = vand.u32 2147483648, %v1355_v16 }
 0x4d8   :  { %v1337_v17 = vmul.f32 %v1724_v12, %v1335_v23  ;;  %1727 = vtanh.f32 %v1311_v26  ;;  %vm1342_vm11 = vweird.f32 %v1724_v12  ;;  %vm1324_vm14 = vmor %vm1322_vm12, %vm1323_vm10  ;;  %vm1361_vm3 = vweird.f32 %v1355_v16 }
 0x4d9   :  { %v1319_v19 = vsub.f32 1.0, %v1318_v56  ;;  %vm1343_vm15 = vmor %vm1341_vm13, %vm1342_vm11  ;;  %v1365_v29 = vand.u32 2147483647, %v1355_v16  ;;  %v1368_v54 = vor.u32 1.1754944e-38, %v1367_v50 }
 0x4da   :  { %v1338_v13 = vsub.f32 1.0, %v1337_v17 }
 0x4db   :  { %v1320_v10 = vmul.f32 %v1722_v62, %v1319_v19  ;;  %vm1366_vm5 = vcmp.eq.f32.partialorder %v1365_v29, 8.507059e+37 }
 0x4dc   :  { %v1339_v22 = vmul.f32 %v1724_v12, %v1338_v13 }
 0x4dd   :  { %v1726_v9 = vpop.eup %1725  ;;  %v1321_v30 = vadd.f32 %v1722_v62, %v1320_v10 }
 0x4de   :  { %v1340_v32 = vadd.f32 %v1724_v12, %v1339_v22  ;;  %v1357_v33 = vmul.f32 %v1726_v9, %v1355_v16  ;;  %v1728_v39 = vpop.eup %1727  ;;  %vm1362_vm2 = vweird.f32 %v1726_v9 }
 0x4df   :  { %v1325_v38 = vsel %vm1324_vm14, %v1722_v62, %v1321_v30  ;;  %vm1363_vm4 = vmor %vm1361_vm3, %vm1362_vm2  ;;  %vm1549_vm2 = vcmask 1047559   ;;  %vm1558_vm3 = vcmask 7175  }
 0x4e0   :  { %v1330_v40 = vsel %vm1327_vm0, %v1329_v31, %v1325_v38  ;;  %v1344_v49 = vsel %vm1343_vm15, %v1724_v12, %v1340_v32  ;;  %v1358_v53 = vsub.f32 1.0, %v1357_v33 }
 0x4e1   :  { %v1349_v41 = vsel %vm1346_vm1, %v1348_v36, %v1344_v49  ;;  %v1375_v44 = vmul.f32 %v1728_v39, %v1330_v40 }
 0x4e2   :  { %v1374_v3 = vmul.f32 %v1372_v34, %v1349_v41  ;;  %v1359_v45 = vmul.f32 %v1726_v9, %v1358_v53 }
 0x4e4   :  { %v2806_v46 = vadd.f32 %v1375_v44, %v1374_v3  ;;  %v1360_v55 = vadd.f32 %v1726_v9, %v1359_v45 }
 0x4e6   :  { %1729 = vtanh.f32 %v2806_v46  ;;  %v1364_v48 = vsel %vm1363_vm4, %v1726_v9, %v1360_v55  ;;  %v1537_v9 = vrot.slane %v2806_v46, 7  ;;  %v1617_v55 = vld [vmem:[%s2824_s4] ss:$0 sm:$0xff] }
 0x4e7   :  { %v1369_v0 = vsel %vm1366_vm5, %v1368_v54, %v1364_v48 }
 0x4ec   :  { %v1730_v59 = vpop.eup %1729 }
 0x4ed   :  { %v1378_v14 = vmul.f32 %v1730_v59, %v1369_v0  ;;  %v1618_v0 = vld [vmem:[#allocation2] ss:$0 sm:$0xff] }
 0x4ef   :  { %v1380_v1 = vrot.slane %v1378_v14, 6 }
 0x4f1   :  { %1398 = vmatmul.f32.vlgmr.msra.gmra.mxu0 %v1380_v1  ;;  %1418 = vmatmul.f32.vlgmr.msra.gmra.mxu1 %v1380_v1 }
 0x4f2   :  { %1438 = vmatmul.f32.vlgmr.msra.gmra.mxu2 %v1380_v1  ;;  %1458 = vmatmul.f32.vlgmr.msra.gmra.mxu3 %v1380_v1 }
 0x56e   :  { %v1399_v58 = vpop.f32.mrf.mxu0  ;;  %v1419_v52 = vpop.f32.mrf.mxu1 }
 0x56f   :  { %v1466_v47 = vrot.slane %v1399_v58, 1  ;;  %v1467_v51 = vrot.slane %v1419_v52, 1 }
 0x571   :  { %v1474_v60 = vadd.f32 %v1466_v47, %v3117_v2  ;;  %v1475_v61 = vadd.f32 %v1467_v51, %v3118_v43 }
 0x573   :  { %v1607_v63 = vmul.f32 -1.442695, %v1474_v60  ;;  %v1608_v42 = vmul.f32 -1.442695, %v1475_v61 }
 0x575   :  { %1731 = vpow2.f32 %v1607_v63  ;;  %v1459_v4 = vpop.f32.mrf.mxu3  ;;  %v1439_v23 = vpop.f32.mrf.mxu2 }
 0x576   :  { %1733 = vpow2.f32 %v1608_v42  ;;  %v1469_v5 = vrot.slane %v1459_v4, 1  ;;  %v1468_v2 = vrot.slane %v1439_v23, 1 }
 0x578   :  { %v1477_v6 = vadd.f32 %v1469_v5, %v3119_v35  ;;  %v1476_v27 = vadd.f32 %v1468_v2, %v3120_v25 }
 0x57a   :  { %v1609_v7 = vmul.f32 -1.442695, %v1477_v6 }
 0x57b   :  { %v1732_v8 = vpop.eup %1731 }
 0x57c   :  { %v1734_v11 = vpop.eup %1733  ;;  %v1481_v15 = vadd.f32 1.0, %v1732_v8  ;;  %1735 = vpow2.f32 %v1609_v7 }
 0x57d   :  { %v1500_v37 = vadd.f32 1.0, %v1734_v11 }
 0x57e   :  { %1737 = vrcp.f32 %v1481_v15  ;;  %v1493_v56 = vand.u32 2147483648, %v1481_v15  ;;  %v1491_v13 = vand.u32 2147483647, %v1481_v15  ;;  %vm1487_vm8 = vweird.f32 %v1481_v15 }
 0x57f   :  { %1739 = vrcp.f32 %v1500_v37  ;;  %v1512_v17 = vand.u32 2147483648, %v1500_v37  ;;  %v1510_v21 = vand.u32 2147483647, %v1500_v37  ;;  %vm1506_vm9 = vweird.f32 %v1500_v37 }
 0x580   :  { %v1494_v25 = vor.u32 1.1754944e-38, %v1493_v56  ;;  %vm1492_vm12 = vcmp.eq.f32.partialorder %v1491_v13, 8.507059e+37 }
 0x581   :  { %v1513_v30 = vor.u32 1.1754944e-38, %v1512_v17  ;;  %vm1511_vm13 = vcmp.eq.f32.partialorder %v1510_v21, 8.507059e+37 }
 0x582   :  { %v1736_v28 = vpop.eup %1735 }
 0x583   :  { %v1520_v43 = vadd.f32 1.0, %v1736_v28 }
 0x584   :  { %v1738_v57 = vpop.eup %1737 }
 0x585   :  { %v1740_v16 = vpop.eup %1739  ;;  %v1483_v62 = vmul.f32 %v1738_v57, %v1481_v15  ;;  %1741 = vrcp.f32 %v1520_v43  ;;  %vm1488_vm6 = vweird.f32 %v1738_v57  ;;  %v1532_v44 = vand.u32 2147483648, %v1520_v43 }
 0x586   :  { %v1502_v26 = vmul.f32 %v1740_v16, %v1500_v37  ;;  %1743 = vtanh.f32 %v1476_v27  ;;  %vm1507_vm7 = vweird.f32 %v1740_v16  ;;  %vm1489_vm10 = vmor %vm1487_vm8, %vm1488_vm6  ;;  %vm1526_vm15 = vweird.f32 %v1520_v43 }
 0x587   :  { %v1484_v35 = vsub.f32 1.0, %v1483_v62  ;;  %vm1508_vm11 = vmor %vm1506_vm9, %vm1507_vm7  ;;  %v1530_v3 = vand.u32 2147483647, %v1520_v43  ;;  %v1533_v46 = vor.u32 1.1754944e-38, %v1532_v44 }
 0x588   :  { %v1503_v12 = vsub.f32 1.0, %v1502_v26 }
 0x589   :  { %v1485_v19 = vmul.f32 %v1738_v57, %v1484_v35  ;;  %vm1531_vm1 = vcmp.eq.f32.partialorder %v1530_v3, 8.507059e+37 }
 0x58a   :  { %v1504_v18 = vmul.f32 %v1740_v16, %v1503_v12 }
 0x58b   :  { %v1742_v10 = vpop.eup %1741  ;;  %v1486_v20 = vadd.f32 %v1738_v57, %v1485_v19 }
 0x58c   :  { %v1505_v22 = vadd.f32 %v1740_v16, %v1504_v18  ;;  %v1522_v24 = vmul.f32 %v1742_v10, %v1520_v43  ;;  %v1744_v32 = vpop.eup %1743  ;;  %vm1527_vm14 = vweird.f32 %v1742_v10 }
 0x58d   :  { %v1490_v31 = vsel %vm1489_vm10, %v1738_v57, %v1486_v20  ;;  %vm1528_vm0 = vmor %vm1526_vm15, %vm1527_vm14 }
 0x58e   :  { %v1495_v33 = vsel %vm1492_vm12, %v1494_v25, %v1490_v31  ;;  %v1509_v34 = vsel %vm1508_vm11, %v1740_v16, %v1505_v22  ;;  %v1523_v36 = vsub.f32 1.0, %v1522_v24 }
 0x58f   :  { %v1540_v38 = vmul.f32 %v1744_v32, %v1495_v33  ;;  %v1514_v39 = vsel %vm1511_vm13, %v1513_v30, %v1509_v34 }
 0x590   :  { %v1524_v40 = vmul.f32 %v1742_v10, %v1523_v36  ;;  %v1539_v49 = vmul.f32 %v1537_v9, %v1514_v39 }
 0x592   :  { %v1541_v53 = vadd.f32 %v1540_v38, %v1539_v49  ;;  %v1525_v41 = vadd.f32 %v1742_v10, %v1524_v40 }
 0x594   :  { %1745 = vtanh.f32 %v1541_v53  ;;  %v1529_v45 = vsel %vm1528_vm0, %v1742_v10, %v1525_v41 }
 0x595   :  { %v1534_v29 = vsel %vm1531_vm1, %v1533_v46, %v1529_v45 }
 0x59a   :  { %v1746_v50 = vpop.eup %1745 }
 0x59b   :  { %v1543_v48 = vmul.f32 %v1746_v50, %v1534_v29 }
 0x59d   :  { %v1548_v54 = vmul.f32 %v1617_v55, %v1543_v48 }
 0x59f   :  { %v1550_v59 = vsel %vm1549_vm2, %v1548_v54, 0.0 }
 0x5a0   :  { %1551 = vadd.xlane.f32.xlu0 %v1550_v59 }
 0x613   :  { %v1552_v14 = vpop.xlane.xlu0 %1551 }
 0x614   :  { %v1557_v1 = vadd.f32 %v1618_v0, %v1552_v14 }
 0x616   :  { %1559 = vst.msk [vmem:[#allocation9 - $0x7] sm:$0x80] %vm1558_vm3, %v1557_v1 }
 0x617   :  { %1570 = dma.vmem_to_hbm [thread:$0]  %s1566_s16, 16, %s1568_s19, [#allocation5]  }
 0x618   :  { %1911 = dma.done.wait [#allocation5], 16  }
 0x619   :  { %1912 = vsyncadd [#allocation5], 4294967280 }
 0x61a   :  { %1575 = vsyncpa [#allocation4], 1 }
 0x61b   :  { %1576 = vsyncpa [#allocation7], 1 }
 0x61c   :  { %1577 = vsyncpa [#allocation5], 1 }

</bundles_post_ra>
